<compile_context>
chip_gen: v6e
topology: v6e:2x2x1
jax: 0.10.0
libtpu: 0.0.40
codegen_flags: <defaults>
</compile_context>

<pallas_src>
import functools

import jax
import jax.numpy as jnp
import numpy as np
from jax.experimental import pallas as pl
from jax.experimental.pallas import tpu as pltpu

LANE = 128


def _round_up(x, m):
    return ((x + m - 1) // m) * m


# ---------------------------------------------------------------------------
# Math helpers (pure-JAX reference)
# ---------------------------------------------------------------------------
def _elu(x):
    # PyTorch nn.ELU default alpha=1.0
    return jnp.where(x > 0, x, jnp.exp(jnp.minimum(x, 0.0)) - 1.0)


def _layernorm(x, eps=1e-5):
    mu = jnp.mean(x, axis=-1, keepdims=True)
    var = jnp.mean((x - mu) * (x - mu), axis=-1, keepdims=True)
    return (x - mu) * jax.lax.rsqrt(var + eps)


# ---------------------------------------------------------------------------
# Kernel
# ---------------------------------------------------------------------------
def sac_kernel(state_ref, w1_ref, w2_ref, w3p_ref, w3q_ref, w4_ref, b_ref,
               out_ref, *, H, Hp, H2, H2p, A, Ap):
    f32, bf16 = jnp.float32, jnp.bfloat16
    inv_H, inv_H2, inv_A = 1.0 / H, 1.0 / H2, 1.0 / A

    def elu(v):
        return jnp.where(v > 0, v, jnp.exp(jnp.minimum(v, 0.0)) - 1.0)

    def ln(v, inv_n):
        # Valid data occupies the first n lanes; padded lanes are exactly zero, so
        # full-width sums scaled by 1/n give the exact mean / E[x^2].  Padded lanes
        # come out as -mu/sigma, which is harmless because every consumer weight row
        # for those lanes is zero.
        mu = jnp.sum(v, axis=-1, keepdims=True) * inv_n
        ex2 = jnp.sum(v * v, axis=-1, keepdims=True) * inv_n
        return (v - mu) * jax.lax.rsqrt(ex2 - mu * mu + 1e-5)

    # bias slab offsets (all multiples of 128)
    o1 = 0                      # stage-1 bias           [3*Hp]
    o2 = o1 + 3 * Hp            # stage-2 bias           [3*Hp]
    o3p = o2 + 3 * Hp           # policy-head bias       [2*Ap]
    o3q = o3p + 2 * Ap          # q-stream layer-1 bias  [4*H2p]
    o4 = o3q + 4 * H2p          # q-stream layer-2 bias  [4*Ap]

    x = state_ref[...].astype(bf16)

    # ---- stage 1: fused first trunk layers (policy | q1 | q2) -> [bt, 3*Hp] ----
    h1 = jnp.dot(x, w1_ref[...], preferred_element_type=f32) + b_ref[:, o1:o1 + 3 * Hp]

    # ---- stage 2: dense per-segment second trunk layers (no zero blocks) ----
    trunks = []
    for k in range(3):
        seg = ln(elu(h1[:, k * Hp:(k + 1) * Hp]), inv_H).astype(bf16)
        g = jnp.dot(seg, w2_ref[k], preferred_element_type=f32) \
            + b_ref[:, o2 + k * Hp:o2 + (k + 1) * Hp]
        trunks.append(ln(elu(g), inv_H).astype(bf16))
    h_pol, h_q1, h_q2 = trunks

    # ---- stage 3a: policy heads (mean | log_std), one Ap-wide lane slot each ----
    heads = jnp.dot(h_pol, w3p_ref[...], preferred_element_type=f32) \
        + b_ref[:, o3p:o3p + 2 * Ap]
    out_ref[:, 0 * Ap:1 * Ap] = heads[:, 0 * Ap:1 * Ap]
    out_ref[:, 1 * Ap:2 * Ap] = jnp.clip(heads[:, 1 * Ap:2 * Ap], -20.0, 2.0)

    # ---- stage 3b + 4: dueling Q streams (value | advantage) ----
    for q, h_q in enumerate((h_q1, h_q2)):
        s = jnp.dot(h_q, w3q_ref[q], preferred_element_type=f32) \
            + b_ref[:, o3q + q * 2 * H2p:o3q + (q + 1) * 2 * H2p]
        sv = ln(elu(s[:, 0 * H2p:1 * H2p]), inv_H2).astype(bf16)
        sa = ln(elu(s[:, 1 * H2p:2 * H2p]), inv_H2).astype(bf16)
        # value weight/bias are replicated across the Ap lanes -> v arrives broadcast;
        # advantage padded lanes are exactly zero, so sum * (1/A) is the exact adv mean.
        v = jnp.dot(sv, w4_ref[2 * q + 0], preferred_element_type=f32) \
            + b_ref[:, o4 + (2 * q + 0) * Ap:o4 + (2 * q + 1) * Ap]
        a = jnp.dot(sa, w4_ref[2 * q + 1], preferred_element_type=f32) \
            + b_ref[:, o4 + (2 * q + 1) * Ap:o4 + (2 * q + 2) * Ap]
        a_mean = jnp.sum(a, axis=-1, keepdims=True) * inv_A
        out_ref[:, (2 + q) * Ap:(3 + q) * Ap] = v + (a - a_mean)


# ---------------------------------------------------------------------------
# Wrapper
# ---------------------------------------------------------------------------
def _whole_spec(arr):
    n = arr.ndim
    return pl.BlockSpec(arr.shape, lambda i, n=n: (0,) * n)


def sac_forward(state, packed):
    H, Hp, H2, H2p, A, Ap = packed["dims"]
    w1, w2, w3p, w3q, w4, bias = (packed[k] for k in ("w1", "w2", "w3p", "w3q", "w4", "bias"))

    B, S = state.shape
    # Single tile up to 512 rows (amortizes per-step overhead on single-core chips);
    # larger batches still produce >=2 "parallel" grid steps for v7x's second core.
    bt = min(_round_up(max(B, 1), 8), 512)
    Bp = _round_up(B, bt)
    state_p = jnp.pad(state, ((0, Bp - B), (0, 0))) if Bp != B else state
    grid = (Bp // bt,)

    kernel = functools.partial(sac_kernel, H=H, Hp=Hp, H2=H2, H2p=H2p, A=A, Ap=Ap)

    in_specs = [pl.BlockSpec((bt, S), lambda i: (i, 0)),
                _whole_spec(w1), _whole_spec(w2), _whole_spec(w3p),
                _whole_spec(w3q), _whole_spec(w4), _whole_spec(bias)]

    # VMEM budget: resident weight/bias slabs + double-buffered state/out tiles
    # + f32 activation temporaries, clamped to [32 MiB, 64 MiB].
    slab_bytes = sum(int(np.prod(a.shape)) * a.dtype.itemsize
                     for a in (w1, w2, w3p, w3q, w4, bias))
    act_bytes = bt * (3 * Hp * 3 + 2 * Ap + 4 * H2p * 2 + 6 * Ap) * 4
    io_bytes = 2 * bt * (S + 4 * Ap) * 4
    vmem_limit = int(min(max(slab_bytes + act_bytes + io_bytes + (4 << 20), 32 << 20), 64 << 20))

    out = pl.pallas_call(
        kernel,
        grid=grid,
        in_specs=in_specs,
        out_specs=pl.BlockSpec((bt, 4 * Ap), lambda i: (i, 0)),
        out_shape=jax.ShapeDtypeStruct((Bp, 4 * Ap), jnp.float32),
        compiler_params=pltpu.CompilerParams(
            dimension_semantics=("parallel",),
            vmem_limit_bytes=vmem_limit),
    )(state_p, w1, w2, w3p, w3q, w4, bias)

    mean = out[:B, 0 * Ap:0 * Ap + A]
    log_std = out[:B, 1 * Ap:1 * Ap + A]
    q1 = out[:B, 2 * Ap:2 * Ap + A]
    q2 = out[:B, 3 * Ap:3 * Ap + A]
    return mean, log_std, q1, q2


# ---------------------------------------------------------------------------
# Deterministic parameter construction (mirrors PyTorch __init__ shapes/inits)
# Weights stored as [in_features, out_features]; biases as [1, out_features].
# ---------------------------------------------------------------------------
def _kaiming_linear(key, fan_in, fan_out):
    std = np.sqrt(2.0 / fan_in)                      # kaiming_normal_, fan_in, relu
    w = jax.random.normal(key, (fan_in, fan_out), jnp.float32) * std
    return w, jnp.zeros((1, fan_out), jnp.float32)


def _xavier_head(key, fan_in, fan_out, gain, bias_val):
    limit = gain * np.sqrt(6.0 / (fan_in + fan_out))
    w = jax.random.uniform(key, (fan_in, fan_out), jnp.float32, -limit, limit)
    return w, jnp.full((1, fan_out), bias_val, jnp.float32)


def build_params(key, state_dim, action_dim, hidden_dim):
    h2 = hidden_dim // 2
    keys = iter(jax.random.split(key, 32))
    params = []
    # policy trunk + heads
    params += _kaiming_linear(next(keys), state_dim, hidden_dim)
    params += _kaiming_linear(next(keys), hidden_dim, hidden_dim)
    params += _xavier_head(next(keys), hidden_dim, action_dim, 0.01, 0.0)
    params += _xavier_head(next(keys), hidden_dim, action_dim, 0.01, -1.0)
    # two dueling Q networks
    for _ in range(2):
        params += _kaiming_linear(next(keys), state_dim, hidden_dim)   # shared 1
        params += _kaiming_linear(next(keys), hidden_dim, hidden_dim)  # shared 2
        params += _kaiming_linear(next(keys), hidden_dim, h2)          # value 1
        params += _kaiming_linear(next(keys), h2, 1)                   # value 2
        params += _kaiming_linear(next(keys), hidden_dim, h2)          # adv 1
        params += _kaiming_linear(next(keys), h2, action_dim)          # adv 2
    return params


def pack_params(params, state_dim, action_dim, hidden_dim, weight_dtype=jnp.bfloat16):
    """Pack the 32 PyTorch-layout params into dense, lane-aligned bf16 slabs."""
    H, H2, A, S = hidden_dim, hidden_dim // 2, action_dim, state_dim
    Hp, H2p, Ap = _round_up(H, LANE), _round_up(H2, LANE), _round_up(A, LANE)

    (Wp1, bp1, Wp2, bp2, Wm, bm, Wl, bl,
     W1s1, b1s1, W1s2, b1s2, W1v1, b1v1, W1v2, b1v2, W1a1, b1a1, W1a2, b1a2,
     W2s1, b2s1, W2s2, b2s2, W2v1, b2v1, W2v2, b2v2, W2a1, b2a1, W2a2, b2a2) = params

    def padw(w, rows, cols):
        r, c = w.shape
        return jnp.pad(w, ((0, rows - r), (0, cols - c)))

    def padb(b, cols):
        return jnp.pad(b, ((0, 0), (0, cols - b.shape[1])))

    # stage 1: [S, 3*Hp]  (policy | q1-shared | q2-shared), each lane-padded to Hp
    W1 = jnp.concatenate([padw(Wp1, S, Hp), padw(W1s1, S, Hp), padw(W2s1, S, Hp)], axis=1)
    b1 = jnp.concatenate([padb(bp1, Hp), padb(b1s1, Hp), padb(b2s1, Hp)], axis=1)

    # stage 2: dense per-segment blocks [3, Hp, Hp]
    W2 = jnp.stack([padw(Wp2, Hp, Hp), padw(W1s2, Hp, Hp), padw(W2s2, Hp, Hp)], axis=0)
    b2 = jnp.concatenate([padb(bp2, Hp), padb(b1s2, Hp), padb(b2s2, Hp)], axis=1)

    # stage 3a: policy heads [Hp, 2*Ap]  (mean | log_std)
    W3p = jnp.concatenate([padw(Wm, Hp, Ap), padw(Wl, Hp, Ap)], axis=1)
    b3p = jnp.concatenate([padb(bm, Ap), padb(bl, Ap)], axis=1)

    # stage 3b: q-stream first layers [2, Hp, 2*H2p]  (value | advantage)
    W3q = jnp.stack([
        jnp.concatenate([padw(W1v1, Hp, H2p), padw(W1a1, Hp, H2p)], axis=1),
        jnp.concatenate([padw(W2v1, Hp, H2p), padw(W2a1, Hp, H2p)], axis=1)], axis=0)
    b3q = jnp.concatenate([padb(b1v1, H2p), padb(b1a1, H2p),
                           padb(b2v1, H2p), padb(b2a1, H2p)], axis=1)

    # stage 4: [4, H2p, Ap]  (q1_value(broadcast) | q1_adv | q2_value(broadcast) | q2_adv)
    def val_slab(wv):  # [H2,1] -> [H2p, Ap], single column replicated across lanes
        return jnp.pad(jnp.tile(wv, (1, Ap)), ((0, H2p - wv.shape[0]), (0, 0)))

    W4 = jnp.stack([val_slab(W1v2), padw(W1a2, H2p, Ap),
                    val_slab(W2v2), padw(W2a2, H2p, Ap)], axis=0)
    b4 = jnp.concatenate([jnp.tile(b1v2, (1, Ap)), padb(b1a2, Ap),
                          jnp.tile(b2v2, (1, Ap)), padb(b2a2, Ap)], axis=1)

    bias = jnp.concatenate([b1, b2, b3p, b3q, b4], axis=1).astype(jnp.float32)
    cast = lambda w: w.astype(weight_dtype)
    return {"w1": cast(W1), "w2": cast(W2), "w3p": cast(W3p), "w3q": cast(W3q),
            "w4": cast(W4), "bias": bias, "dims": (H, Hp, H2, H2p, A, Ap)}


# ---------------------------------------------------------------------------
# Pure-JAX reference (unfused, same math as the PyTorch module in eval mode)
# ---------------------------------------------------------------------------
def _linear_f32(x, w, b):
    return x @ w + b


def _linear_bf16(x, w, b):
    # Same bf16 weight/activation quantization the kernel uses (f32 accumulation).
    return jnp.dot(x.astype(jnp.bfloat16), w.astype(jnp.bfloat16),
                   preferred_element_type=jnp.float32) + b


def sac_reference(state, params, linear=_linear_f32):
    it = iter(params)

    def lin(x):
        w = next(it); b = next(it)
        return linear(x, w, b)

    def trunk(x):
        h = _layernorm(_elu(lin(x)))
        return _layernorm(_elu(lin(h)))

    pf = trunk(state)
    mean = lin(pf)
    log_std = jnp.clip(lin(pf), -20.0, 2.0)

    def dueling(x):
        sh = trunk(x)
        v = lin(_layernorm(_elu(lin(sh))))
        a = lin(_layernorm(_elu(lin(sh))))
        return v + (a - jnp.mean(a, axis=-1, keepdims=True))

    q1 = dueling(state)
    q2 = dueling(state)
    return mean, log_std, q1, q2


# ---------------------------------------------------------------------------
if __name__ == "__main__":
    B, STATE_DIM, ACTION_DIM, HIDDEN = 8, 16, 4, 32

    key = jax.random.PRNGKey(0)
    k_state, k_params = jax.random.split(key)

    state = jax.random.normal(k_state, (B, STATE_DIM), jnp.float32)
    params = build_params(k_params, STATE_DIM, ACTION_DIM, HIDDEN)
    packed = pack_params(params, STATE_DIM, ACTION_DIM, HIDDEN)

    outs = jax.block_until_ready(sac_forward(state, packed))
    mean, log_std, q1, q2 = outs

    # Tight check vs a reference that applies the same bf16 weight quantization:
    # validates the fused/padded layout (a layout bug would give O(1) errors).
    ref_q = sac_reference(state, params, linear=_linear_bf16)
    for got, want in zip(outs, ref_q):
        assert got.shape == want.shape, (got.shape, want.shape)
        assert jnp.allclose(got, want, atol=1e-2, rtol=2e-2), "mismatch vs bf16-matched reference"

    # Loose sanity check vs the full-f32 unfused reference (bf16 quantization noise only).
    ref = sac_reference(state, params)
    for got, want in zip(outs, ref):
        assert float(jnp.max(jnp.abs(got - want))) < 0.2, "drift vs f32 reference too large"

    print("KERNEL_OK")
</pallas_src>

<mosaic_0001>
module attributes {stable_mosaic.version = 11 : i64} {
  func.func @sac_kernel(%arg0: i32, %arg1: memref<8x16xf32, #tpu.memory_space<vmem>>, %arg2: memref<16x384xbf16, #tpu.memory_space<vmem>>, %arg3: memref<3x128x128xbf16, #tpu.memory_space<vmem>>, %arg4: memref<128x256xbf16, #tpu.memory_space<vmem>>, %arg5: memref<2x128x256xbf16, #tpu.memory_space<vmem>>, %arg6: memref<4x128x128xbf16, #tpu.memory_space<vmem>>, %arg7: memref<1x2048xf32, #tpu.memory_space<vmem>>, %arg8: memref<8x512xf32, #tpu.memory_space<vmem>>) attributes {dimension_semantics = [#tpu.dimension_semantics<parallel>], iteration_bounds = array<i64: 1>, scalar_prefetch = 0 : i64, scratch_operands = 0 : i64, tpu.core_type = #tpu.core_type<tc>, window_params = [{transform_indices = @transform_0, window_bounds = array<i64: 8, 16>}, {pipeline_mode = #tpu.pipeline_mode<synchronous>, transform_indices = @transform_1, window_bounds = array<i64: 16, 384>}, {pipeline_mode = #tpu.pipeline_mode<synchronous>, transform_indices = @transform_2, window_bounds = array<i64: 3, 128, 128>}, {pipeline_mode = #tpu.pipeline_mode<synchronous>, transform_indices = @transform_3, window_bounds = array<i64: 128, 256>}, {pipeline_mode = #tpu.pipeline_mode<synchronous>, transform_indices = @transform_4, window_bounds = array<i64: 2, 128, 256>}, {pipeline_mode = #tpu.pipeline_mode<synchronous>, transform_indices = @transform_5, window_bounds = array<i64: 4, 128, 128>}, {pipeline_mode = #tpu.pipeline_mode<synchronous>, transform_indices = @transform_6, window_bounds = array<i64: 1, 2048>}, {transform_indices = @transform_7, window_bounds = array<i64: 8, 512>}]} {
    %c0 = arith.constant 0 : index
    %c0_0 = arith.constant 0 : index
    %0 = vector.load %arg1[%c0, %c0_0] : memref<8x16xf32, #tpu.memory_space<vmem>>, vector<8x16xf32>
    %1 = arith.truncf %0 : vector<8x16xf32> to vector<8x16xbf16>
    %c0_1 = arith.constant 0 : index
    %c0_2 = arith.constant 0 : index
    %2 = vector.load %arg2[%c0_1, %c0_2] : memref<16x384xbf16, #tpu.memory_space<vmem>>, vector<16x384xbf16>
    %cst = arith.constant dense<0.000000e+00> : vector<8x384xf32>
    %3 = tpu.matmul %1, %2, %cst {dimension_numbers = #tpu.dot_dimension_numbers<[1], [0], [0], [1], [0, 0, 1, 1], [], []>} : vector<8x16xbf16>, vector<16x384xbf16>, vector<8x384xf32> -> vector<8x384xf32>
    %c0_3 = arith.constant 0 : index
    %c0_4 = arith.constant 0 : index
    %4 = vector.load %arg7[%c0_3, %c0_4] : memref<1x2048xf32, #tpu.memory_space<vmem>>, vector<1x384xf32>
    %5 = vector.broadcast %4 : vector<1x384xf32> to vector<8x384xf32>
    %6 = arith.addf %3, %5 : vector<8x384xf32>
    %7 = vector.extract_strided_slice %6 {offsets = [0, 0], sizes = [8, 128], strides = [1, 1]} : vector<8x384xf32> to vector<8x128xf32>
    %cst_5 = arith.constant 0.000000e+00 : f32
    %8 = vector.broadcast %cst_5 : f32 to vector<8x128xf32>
    %9 = arith.cmpf ogt, %7, %8 : vector<8x128xf32>
    %cst_6 = arith.constant 0.000000e+00 : f32
    %10 = vector.broadcast %cst_6 : f32 to vector<8x128xf32>
    %11 = arith.minimumf %7, %10 : vector<8x128xf32>
    %12 = math.exp %11 : vector<8x128xf32>
    %cst_7 = arith.constant 1.000000e+00 : f32
    %13 = vector.broadcast %cst_7 : f32 to vector<8x128xf32>
    %14 = arith.subf %12, %13 : vector<8x128xf32>
    %15 = arith.select %9, %7, %14 : vector<8x128xi1>, vector<8x128xf32>
    %cst_8 = arith.constant dense<0.000000e+00> : vector<8xf32>
    %16 = vector.multi_reduction <add>, %15, %cst_8 [1] : vector<8x128xf32> to vector<8xf32>
    %17 = vector.shape_cast %16 : vector<8xf32> to vector<8x1xf32>
    %cst_9 = arith.constant 3.125000e-02 : f32
    %18 = vector.broadcast %cst_9 : f32 to vector<8x1xf32>
    %19 = arith.mulf %17, %18 : vector<8x1xf32>
    %20 = arith.mulf %15, %15 : vector<8x128xf32>
    %cst_10 = arith.constant dense<0.000000e+00> : vector<8xf32>
    %21 = vector.multi_reduction <add>, %20, %cst_10 [1] : vector<8x128xf32> to vector<8xf32>
    %22 = vector.shape_cast %21 : vector<8xf32> to vector<8x1xf32>
    %cst_11 = arith.constant 3.125000e-02 : f32
    %23 = vector.broadcast %cst_11 : f32 to vector<8x1xf32>
    %24 = arith.mulf %22, %23 : vector<8x1xf32>
    %25 = vector.broadcast %19 : vector<8x1xf32> to vector<8x128xf32>
    %26 = arith.subf %15, %25 : vector<8x128xf32>
    %27 = arith.mulf %19, %19 : vector<8x1xf32>
    %28 = arith.subf %24, %27 : vector<8x1xf32>
    %cst_12 = arith.constant 9.99999974E-6 : f32
    %29 = vector.broadcast %cst_12 : f32 to vector<8x1xf32>
    %30 = arith.addf %28, %29 : vector<8x1xf32>
    %31 = math.rsqrt %30 : vector<8x1xf32>
    %32 = vector.broadcast %31 : vector<8x1xf32> to vector<8x128xf32>
    %33 = arith.mulf %26, %32 : vector<8x128xf32>
    %34 = arith.truncf %33 : vector<8x128xf32> to vector<8x128xbf16>
    %c0_13 = arith.constant 0 : index
    %c0_14 = arith.constant 0 : index
    %c0_15 = arith.constant 0 : index
    %35 = vector.load %arg3[%c0_13, %c0_14, %c0_15] : memref<3x128x128xbf16, #tpu.memory_space<vmem>>, vector<1x128x128xbf16>
    %36 = vector.shape_cast %35 : vector<1x128x128xbf16> to vector<128x128xbf16>
    %cst_16 = arith.constant dense<0.000000e+00> : vector<8x128xf32>
    %37 = tpu.matmul %34, %36, %cst_16 {dimension_numbers = #tpu.dot_dimension_numbers<[1], [0], [0], [1], [0, 0, 1, 1], [], []>} : vector<8x128xbf16>, vector<128x128xbf16>, vector<8x128xf32> -> vector<8x128xf32>
    %c0_17 = arith.constant 0 : index
    %c384 = arith.constant 384 : index
    %38 = vector.load %arg7[%c0_17, %c384] : memref<1x2048xf32, #tpu.memory_space<vmem>>, vector<1x128xf32>
    %39 = vector.broadcast %38 : vector<1x128xf32> to vector<8x128xf32>
    %40 = arith.addf %37, %39 : vector<8x128xf32>
    %cst_18 = arith.constant 0.000000e+00 : f32
    %41 = vector.broadcast %cst_18 : f32 to vector<8x128xf32>
    %42 = arith.cmpf ogt, %40, %41 : vector<8x128xf32>
    %cst_19 = arith.constant 0.000000e+00 : f32
    %43 = vector.broadcast %cst_19 : f32 to vector<8x128xf32>
    %44 = arith.minimumf %40, %43 : vector<8x128xf32>
    %45 = math.exp %44 : vector<8x128xf32>
    %cst_20 = arith.constant 1.000000e+00 : f32
    %46 = vector.broadcast %cst_20 : f32 to vector<8x128xf32>
    %47 = arith.subf %45, %46 : vector<8x128xf32>
    %48 = arith.select %42, %40, %47 : vector<8x128xi1>, vector<8x128xf32>
    %cst_21 = arith.constant dense<0.000000e+00> : vector<8xf32>
    %49 = vector.multi_reduction <add>, %48, %cst_21 [1] : vector<8x128xf32> to vector<8xf32>
    %50 = vector.shape_cast %49 : vector<8xf32> to vector<8x1xf32>
    %cst_22 = arith.constant 3.125000e-02 : f32
    %51 = vector.broadcast %cst_22 : f32 to vector<8x1xf32>
    %52 = arith.mulf %50, %51 : vector<8x1xf32>
    %53 = arith.mulf %48, %48 : vector<8x128xf32>
    %cst_23 = arith.constant dense<0.000000e+00> : vector<8xf32>
    %54 = vector.multi_reduction <add>, %53, %cst_23 [1] : vector<8x128xf32> to vector<8xf32>
    %55 = vector.shape_cast %54 : vector<8xf32> to vector<8x1xf32>
    %cst_24 = arith.constant 3.125000e-02 : f32
    %56 = vector.broadcast %cst_24 : f32 to vector<8x1xf32>
    %57 = arith.mulf %55, %56 : vector<8x1xf32>
    %58 = vector.broadcast %52 : vector<8x1xf32> to vector<8x128xf32>
    %59 = arith.subf %48, %58 : vector<8x128xf32>
    %60 = arith.mulf %52, %52 : vector<8x1xf32>
    %61 = arith.subf %57, %60 : vector<8x1xf32>
    %cst_25 = arith.constant 9.99999974E-6 : f32
    %62 = vector.broadcast %cst_25 : f32 to vector<8x1xf32>
    %63 = arith.addf %61, %62 : vector<8x1xf32>
    %64 = math.rsqrt %63 : vector<8x1xf32>
    %65 = vector.broadcast %64 : vector<8x1xf32> to vector<8x128xf32>
    %66 = arith.mulf %59, %65 : vector<8x128xf32>
    %67 = arith.truncf %66 : vector<8x128xf32> to vector<8x128xbf16>
    %68 = vector.extract_strided_slice %6 {offsets = [0, 128], sizes = [8, 128], strides = [1, 1]} : vector<8x384xf32> to vector<8x128xf32>
    %cst_26 = arith.constant 0.000000e+00 : f32
    %69 = vector.broadcast %cst_26 : f32 to vector<8x128xf32>
    %70 = arith.cmpf ogt, %68, %69 : vector<8x128xf32>
    %cst_27 = arith.constant 0.000000e+00 : f32
    %71 = vector.broadcast %cst_27 : f32 to vector<8x128xf32>
    %72 = arith.minimumf %68, %71 : vector<8x128xf32>
    %73 = math.exp %72 : vector<8x128xf32>
    %cst_28 = arith.constant 1.000000e+00 : f32
    %74 = vector.broadcast %cst_28 : f32 to vector<8x128xf32>
    %75 = arith.subf %73, %74 : vector<8x128xf32>
    %76 = arith.select %70, %68, %75 : vector<8x128xi1>, vector<8x128xf32>
    %cst_29 = arith.constant dense<0.000000e+00> : vector<8xf32>
    %77 = vector.multi_reduction <add>, %76, %cst_29 [1] : vector<8x128xf32> to vector<8xf32>
    %78 = vector.shape_cast %77 : vector<8xf32> to vector<8x1xf32>
    %cst_30 = arith.constant 3.125000e-02 : f32
    %79 = vector.broadcast %cst_30 : f32 to vector<8x1xf32>
    %80 = arith.mulf %78, %79 : vector<8x1xf32>
    %81 = arith.mulf %76, %76 : vector<8x128xf32>
    %cst_31 = arith.constant dense<0.000000e+00> : vector<8xf32>
    %82 = vector.multi_reduction <add>, %81, %cst_31 [1] : vector<8x128xf32> to vector<8xf32>
    %83 = vector.shape_cast %82 : vector<8xf32> to vector<8x1xf32>
    %cst_32 = arith.constant 3.125000e-02 : f32
    %84 = vector.broadcast %cst_32 : f32 to vector<8x1xf32>
    %85 = arith.mulf %83, %84 : vector<8x1xf32>
    %86 = vector.broadcast %80 : vector<8x1xf32> to vector<8x128xf32>
    %87 = arith.subf %76, %86 : vector<8x128xf32>
    %88 = arith.mulf %80, %80 : vector<8x1xf32>
    %89 = arith.subf %85, %88 : vector<8x1xf32>
    %cst_33 = arith.constant 9.99999974E-6 : f32
    %90 = vector.broadcast %cst_33 : f32 to vector<8x1xf32>
    %91 = arith.addf %89, %90 : vector<8x1xf32>
    %92 = math.rsqrt %91 : vector<8x1xf32>
    %93 = vector.broadcast %92 : vector<8x1xf32> to vector<8x128xf32>
    %94 = arith.mulf %87, %93 : vector<8x128xf32>
    %95 = arith.truncf %94 : vector<8x128xf32> to vector<8x128xbf16>
    %c1 = arith.constant 1 : index
    %c0_34 = arith.constant 0 : index
    %c0_35 = arith.constant 0 : index
    %96 = vector.load %arg3[%c1, %c0_34, %c0_35] : memref<3x128x128xbf16, #tpu.memory_space<vmem>>, vector<1x128x128xbf16>
    %97 = vector.shape_cast %96 : vector<1x128x128xbf16> to vector<128x128xbf16>
    %cst_36 = arith.constant dense<0.000000e+00> : vector<8x128xf32>
    %98 = tpu.matmul %95, %97, %cst_36 {dimension_numbers = #tpu.dot_dimension_numbers<[1], [0], [0], [1], [0, 0, 1, 1], [], []>} : vector<8x128xbf16>, vector<128x128xbf16>, vector<8x128xf32> -> vector<8x128xf32>
    %c0_37 = arith.constant 0 : index
    %c512 = arith.constant 512 : index
    %99 = vector.load %arg7[%c0_37, %c512] : memref<1x2048xf32, #tpu.memory_space<vmem>>, vector<1x128xf32>
    %100 = vector.broadcast %99 : vector<1x128xf32> to vector<8x128xf32>
    %101 = arith.addf %98, %100 : vector<8x128xf32>
    %cst_38 = arith.constant 0.000000e+00 : f32
    %102 = vector.broadcast %cst_38 : f32 to vector<8x128xf32>
    %103 = arith.cmpf ogt, %101, %102 : vector<8x128xf32>
    %cst_39 = arith.constant 0.000000e+00 : f32
    %104 = vector.broadcast %cst_39 : f32 to vector<8x128xf32>
    %105 = arith.minimumf %101, %104 : vector<8x128xf32>
    %106 = math.exp %105 : vector<8x128xf32>
    %cst_40 = arith.constant 1.000000e+00 : f32
    %107 = vector.broadcast %cst_40 : f32 to vector<8x128xf32>
    %108 = arith.subf %106, %107 : vector<8x128xf32>
    %109 = arith.select %103, %101, %108 : vector<8x128xi1>, vector<8x128xf32>
    %cst_41 = arith.constant dense<0.000000e+00> : vector<8xf32>
    %110 = vector.multi_reduction <add>, %109, %cst_41 [1] : vector<8x128xf32> to vector<8xf32>
    %111 = vector.shape_cast %110 : vector<8xf32> to vector<8x1xf32>
    %cst_42 = arith.constant 3.125000e-02 : f32
    %112 = vector.broadcast %cst_42 : f32 to vector<8x1xf32>
    %113 = arith.mulf %111, %112 : vector<8x1xf32>
    %114 = arith.mulf %109, %109 : vector<8x128xf32>
    %cst_43 = arith.constant dense<0.000000e+00> : vector<8xf32>
    %115 = vector.multi_reduction <add>, %114, %cst_43 [1] : vector<8x128xf32> to vector<8xf32>
    %116 = vector.shape_cast %115 : vector<8xf32> to vector<8x1xf32>
    %cst_44 = arith.constant 3.125000e-02 : f32
    %117 = vector.broadcast %cst_44 : f32 to vector<8x1xf32>
    %118 = arith.mulf %116, %117 : vector<8x1xf32>
    %119 = vector.broadcast %113 : vector<8x1xf32> to vector<8x128xf32>
    %120 = arith.subf %109, %119 : vector<8x128xf32>
    %121 = arith.mulf %113, %113 : vector<8x1xf32>
    %122 = arith.subf %118, %121 : vector<8x1xf32>
    %cst_45 = arith.constant 9.99999974E-6 : f32
    %123 = vector.broadcast %cst_45 : f32 to vector<8x1xf32>
    %124 = arith.addf %122, %123 : vector<8x1xf32>
    %125 = math.rsqrt %124 : vector<8x1xf32>
    %126 = vector.broadcast %125 : vector<8x1xf32> to vector<8x128xf32>
    %127 = arith.mulf %120, %126 : vector<8x128xf32>
    %128 = arith.truncf %127 : vector<8x128xf32> to vector<8x128xbf16>
    %129 = vector.extract_strided_slice %6 {offsets = [0, 256], sizes = [8, 128], strides = [1, 1]} : vector<8x384xf32> to vector<8x128xf32>
    %cst_46 = arith.constant 0.000000e+00 : f32
    %130 = vector.broadcast %cst_46 : f32 to vector<8x128xf32>
    %131 = arith.cmpf ogt, %129, %130 : vector<8x128xf32>
    %cst_47 = arith.constant 0.000000e+00 : f32
    %132 = vector.broadcast %cst_47 : f32 to vector<8x128xf32>
    %133 = arith.minimumf %129, %132 : vector<8x128xf32>
    %134 = math.exp %133 : vector<8x128xf32>
    %cst_48 = arith.constant 1.000000e+00 : f32
    %135 = vector.broadcast %cst_48 : f32 to vector<8x128xf32>
    %136 = arith.subf %134, %135 : vector<8x128xf32>
    %137 = arith.select %131, %129, %136 : vector<8x128xi1>, vector<8x128xf32>
    %cst_49 = arith.constant dense<0.000000e+00> : vector<8xf32>
    %138 = vector.multi_reduction <add>, %137, %cst_49 [1] : vector<8x128xf32> to vector<8xf32>
    %139 = vector.shape_cast %138 : vector<8xf32> to vector<8x1xf32>
    %cst_50 = arith.constant 3.125000e-02 : f32
    %140 = vector.broadcast %cst_50 : f32 to vector<8x1xf32>
    %141 = arith.mulf %139, %140 : vector<8x1xf32>
    %142 = arith.mulf %137, %137 : vector<8x128xf32>
    %cst_51 = arith.constant dense<0.000000e+00> : vector<8xf32>
    %143 = vector.multi_reduction <add>, %142, %cst_51 [1] : vector<8x128xf32> to vector<8xf32>
    %144 = vector.shape_cast %143 : vector<8xf32> to vector<8x1xf32>
    %cst_52 = arith.constant 3.125000e-02 : f32
    %145 = vector.broadcast %cst_52 : f32 to vector<8x1xf32>
    %146 = arith.mulf %144, %145 : vector<8x1xf32>
    %147 = vector.broadcast %141 : vector<8x1xf32> to vector<8x128xf32>
    %148 = arith.subf %137, %147 : vector<8x128xf32>
    %149 = arith.mulf %141, %141 : vector<8x1xf32>
    %150 = arith.subf %146, %149 : vector<8x1xf32>
    %cst_53 = arith.constant 9.99999974E-6 : f32
    %151 = vector.broadcast %cst_53 : f32 to vector<8x1xf32>
    %152 = arith.addf %150, %151 : vector<8x1xf32>
    %153 = math.rsqrt %152 : vector<8x1xf32>
    %154 = vector.broadcast %153 : vector<8x1xf32> to vector<8x128xf32>
    %155 = arith.mulf %148, %154 : vector<8x128xf32>
    %156 = arith.truncf %155 : vector<8x128xf32> to vector<8x128xbf16>
    %c2 = arith.constant 2 : index
    %c0_54 = arith.constant 0 : index
    %c0_55 = arith.constant 0 : index
    %157 = vector.load %arg3[%c2, %c0_54, %c0_55] : memref<3x128x128xbf16, #tpu.memory_space<vmem>>, vector<1x128x128xbf16>
    %158 = vector.shape_cast %157 : vector<1x128x128xbf16> to vector<128x128xbf16>
    %cst_56 = arith.constant dense<0.000000e+00> : vector<8x128xf32>
    %159 = tpu.matmul %156, %158, %cst_56 {dimension_numbers = #tpu.dot_dimension_numbers<[1], [0], [0], [1], [0, 0, 1, 1], [], []>} : vector<8x128xbf16>, vector<128x128xbf16>, vector<8x128xf32> -> vector<8x128xf32>
    %c0_57 = arith.constant 0 : index
    %c640 = arith.constant 640 : index
    %160 = vector.load %arg7[%c0_57, %c640] : memref<1x2048xf32, #tpu.memory_space<vmem>>, vector<1x128xf32>
    %161 = vector.broadcast %160 : vector<1x128xf32> to vector<8x128xf32>
    %162 = arith.addf %159, %161 : vector<8x128xf32>
    %cst_58 = arith.constant 0.000000e+00 : f32
    %163 = vector.broadcast %cst_58 : f32 to vector<8x128xf32>
    %164 = arith.cmpf ogt, %162, %163 : vector<8x128xf32>
    %cst_59 = arith.constant 0.000000e+00 : f32
    %165 = vector.broadcast %cst_59 : f32 to vector<8x128xf32>
    %166 = arith.minimumf %162, %165 : vector<8x128xf32>
    %167 = math.exp %166 : vector<8x128xf32>
    %cst_60 = arith.constant 1.000000e+00 : f32
    %168 = vector.broadcast %cst_60 : f32 to vector<8x128xf32>
    %169 = arith.subf %167, %168 : vector<8x128xf32>
    %170 = arith.select %164, %162, %169 : vector<8x128xi1>, vector<8x128xf32>
    %cst_61 = arith.constant dense<0.000000e+00> : vector<8xf32>
    %171 = vector.multi_reduction <add>, %170, %cst_61 [1] : vector<8x128xf32> to vector<8xf32>
    %172 = vector.shape_cast %171 : vector<8xf32> to vector<8x1xf32>
    %cst_62 = arith.constant 3.125000e-02 : f32
    %173 = vector.broadcast %cst_62 : f32 to vector<8x1xf32>
    %174 = arith.mulf %172, %173 : vector<8x1xf32>
    %175 = arith.mulf %170, %170 : vector<8x128xf32>
    %cst_63 = arith.constant dense<0.000000e+00> : vector<8xf32>
    %176 = vector.multi_reduction <add>, %175, %cst_63 [1] : vector<8x128xf32> to vector<8xf32>
    %177 = vector.shape_cast %176 : vector<8xf32> to vector<8x1xf32>
    %cst_64 = arith.constant 3.125000e-02 : f32
    %178 = vector.broadcast %cst_64 : f32 to vector<8x1xf32>
    %179 = arith.mulf %177, %178 : vector<8x1xf32>
    %180 = vector.broadcast %174 : vector<8x1xf32> to vector<8x128xf32>
    %181 = arith.subf %170, %180 : vector<8x128xf32>
    %182 = arith.mulf %174, %174 : vector<8x1xf32>
    %183 = arith.subf %179, %182 : vector<8x1xf32>
    %cst_65 = arith.constant 9.99999974E-6 : f32
    %184 = vector.broadcast %cst_65 : f32 to vector<8x1xf32>
    %185 = arith.addf %183, %184 : vector<8x1xf32>
    %186 = math.rsqrt %185 : vector<8x1xf32>
    %187 = vector.broadcast %186 : vector<8x1xf32> to vector<8x128xf32>
    %188 = arith.mulf %181, %187 : vector<8x128xf32>
    %189 = arith.truncf %188 : vector<8x128xf32> to vector<8x128xbf16>
    %c0_66 = arith.constant 0 : index
    %c0_67 = arith.constant 0 : index
    %190 = vector.load %arg4[%c0_66, %c0_67] : memref<128x256xbf16, #tpu.memory_space<vmem>>, vector<128x256xbf16>
    %cst_68 = arith.constant dense<0.000000e+00> : vector<8x256xf32>
    %191 = tpu.matmul %67, %190, %cst_68 {dimension_numbers = #tpu.dot_dimension_numbers<[1], [0], [0], [1], [0, 0, 1, 1], [], []>} : vector<8x128xbf16>, vector<128x256xbf16>, vector<8x256xf32> -> vector<8x256xf32>
    %c0_69 = arith.constant 0 : index
    %c768 = arith.constant 768 : index
    %192 = vector.load %arg7[%c0_69, %c768] : memref<1x2048xf32, #tpu.memory_space<vmem>>, vector<1x256xf32>
    %193 = vector.broadcast %192 : vector<1x256xf32> to vector<8x256xf32>
    %194 = arith.addf %191, %193 : vector<8x256xf32>
    %195 = vector.extract_strided_slice %194 {offsets = [0, 0], sizes = [8, 128], strides = [1, 1]} : vector<8x256xf32> to vector<8x128xf32>
    %c0_70 = arith.constant 0 : index
    %c0_71 = arith.constant 0 : index
    %196 = vector.load %arg8[%c0_70, %c0_71] : memref<8x512xf32, #tpu.memory_space<vmem>>, vector<8x128xf32>
    tpu.vector_store %arg8[%c0_70, %c0_71], %195 {strides = array<i32>} : memref<8x512xf32, #tpu.memory_space<vmem>>, vector<8x128xf32>,
    %197 = vector.extract_strided_slice %194 {offsets = [0, 128], sizes = [8, 128], strides = [1, 1]} : vector<8x256xf32> to vector<8x128xf32>
    %cst_72 = arith.constant -2.000000e+01 : f32
    %cst_73 = arith.constant 2.000000e+00 : f32
    %198 = vector.broadcast %cst_72 : f32 to vector<8x128xf32>
    %199 = arith.maximumf %198, %197 : vector<8x128xf32>
    %200 = vector.broadcast %cst_73 : f32 to vector<8x128xf32>
    %201 = arith.minimumf %200, %199 : vector<8x128xf32>
    %c0_74 = arith.constant 0 : index
    %c128 = arith.constant 128 : index
    %202 = vector.load %arg8[%c0_74, %c128] : memref<8x512xf32, #tpu.memory_space<vmem>>, vector<8x128xf32>
    tpu.vector_store %arg8[%c0_74, %c128], %201 {strides = array<i32>} : memref<8x512xf32, #tpu.memory_space<vmem>>, vector<8x128xf32>,
    %c0_75 = arith.constant 0 : index
    %c0_76 = arith.constant 0 : index
    %c0_77 = arith.constant 0 : index
    %203 = vector.load %arg5[%c0_75, %c0_76, %c0_77] : memref<2x128x256xbf16, #tpu.memory_space<vmem>>, vector<1x128x256xbf16>
    %204 = vector.shape_cast %203 : vector<1x128x256xbf16> to vector<128x256xbf16>
    %cst_78 = arith.constant dense<0.000000e+00> : vector<8x256xf32>
    %205 = tpu.matmul %128, %204, %cst_78 {dimension_numbers = #tpu.dot_dimension_numbers<[1], [0], [0], [1], [0, 0, 1, 1], [], []>} : vector<8x128xbf16>, vector<128x256xbf16>, vector<8x256xf32> -> vector<8x256xf32>
    %c0_79 = arith.constant 0 : index
    %c1024 = arith.constant 1024 : index
    %206 = vector.load %arg7[%c0_79, %c1024] : memref<1x2048xf32, #tpu.memory_space<vmem>>, vector<1x256xf32>
    %207 = vector.broadcast %206 : vector<1x256xf32> to vector<8x256xf32>
    %208 = arith.addf %205, %207 : vector<8x256xf32>
    %209 = vector.extract_strided_slice %208 {offsets = [0, 0], sizes = [8, 128], strides = [1, 1]} : vector<8x256xf32> to vector<8x128xf32>
    %cst_80 = arith.constant 0.000000e+00 : f32
    %210 = vector.broadcast %cst_80 : f32 to vector<8x128xf32>
    %211 = arith.cmpf ogt, %209, %210 : vector<8x128xf32>
    %cst_81 = arith.constant 0.000000e+00 : f32
    %212 = vector.broadcast %cst_81 : f32 to vector<8x128xf32>
    %213 = arith.minimumf %209, %212 : vector<8x128xf32>
    %214 = math.exp %213 : vector<8x128xf32>
    %cst_82 = arith.constant 1.000000e+00 : f32
    %215 = vector.broadcast %cst_82 : f32 to vector<8x128xf32>
    %216 = arith.subf %214, %215 : vector<8x128xf32>
    %217 = arith.select %211, %209, %216 : vector<8x128xi1>, vector<8x128xf32>
    %cst_83 = arith.constant dense<0.000000e+00> : vector<8xf32>
    %218 = vector.multi_reduction <add>, %217, %cst_83 [1] : vector<8x128xf32> to vector<8xf32>
    %219 = vector.shape_cast %218 : vector<8xf32> to vector<8x1xf32>
    %cst_84 = arith.constant 6.250000e-02 : f32
    %220 = vector.broadcast %cst_84 : f32 to vector<8x1xf32>
    %221 = arith.mulf %219, %220 : vector<8x1xf32>
    %222 = arith.mulf %217, %217 : vector<8x128xf32>
    %cst_85 = arith.constant dense<0.000000e+00> : vector<8xf32>
    %223 = vector.multi_reduction <add>, %222, %cst_85 [1] : vector<8x128xf32> to vector<8xf32>
    %224 = vector.shape_cast %223 : vector<8xf32> to vector<8x1xf32>
    %cst_86 = arith.constant 6.250000e-02 : f32
    %225 = vector.broadcast %cst_86 : f32 to vector<8x1xf32>
    %226 = arith.mulf %224, %225 : vector<8x1xf32>
    %227 = vector.broadcast %221 : vector<8x1xf32> to vector<8x128xf32>
    %228 = arith.subf %217, %227 : vector<8x128xf32>
    %229 = arith.mulf %221, %221 : vector<8x1xf32>
    %230 = arith.subf %226, %229 : vector<8x1xf32>
    %cst_87 = arith.constant 9.99999974E-6 : f32
    %231 = vector.broadcast %cst_87 : f32 to vector<8x1xf32>
    %232 = arith.addf %230, %231 : vector<8x1xf32>
    %233 = math.rsqrt %232 : vector<8x1xf32>
    %234 = vector.broadcast %233 : vector<8x1xf32> to vector<8x128xf32>
    %235 = arith.mulf %228, %234 : vector<8x128xf32>
    %236 = arith.truncf %235 : vector<8x128xf32> to vector<8x128xbf16>
    %237 = vector.extract_strided_slice %208 {offsets = [0, 128], sizes = [8, 128], strides = [1, 1]} : vector<8x256xf32> to vector<8x128xf32>
    %cst_88 = arith.constant 0.000000e+00 : f32
    %238 = vector.broadcast %cst_88 : f32 to vector<8x128xf32>
    %239 = arith.cmpf ogt, %237, %238 : vector<8x128xf32>
    %cst_89 = arith.constant 0.000000e+00 : f32
    %240 = vector.broadcast %cst_89 : f32 to vector<8x128xf32>
    %241 = arith.minimumf %237, %240 : vector<8x128xf32>
    %242 = math.exp %241 : vector<8x128xf32>
    %cst_90 = arith.constant 1.000000e+00 : f32
    %243 = vector.broadcast %cst_90 : f32 to vector<8x128xf32>
    %244 = arith.subf %242, %243 : vector<8x128xf32>
    %245 = arith.select %239, %237, %244 : vector<8x128xi1>, vector<8x128xf32>
    %cst_91 = arith.constant dense<0.000000e+00> : vector<8xf32>
    %246 = vector.multi_reduction <add>, %245, %cst_91 [1] : vector<8x128xf32> to vector<8xf32>
    %247 = vector.shape_cast %246 : vector<8xf32> to vector<8x1xf32>
    %cst_92 = arith.constant 6.250000e-02 : f32
    %248 = vector.broadcast %cst_92 : f32 to vector<8x1xf32>
    %249 = arith.mulf %247, %248 : vector<8x1xf32>
    %250 = arith.mulf %245, %245 : vector<8x128xf32>
    %cst_93 = arith.constant dense<0.000000e+00> : vector<8xf32>
    %251 = vector.multi_reduction <add>, %250, %cst_93 [1] : vector<8x128xf32> to vector<8xf32>
    %252 = vector.shape_cast %251 : vector<8xf32> to vector<8x1xf32>
    %cst_94 = arith.constant 6.250000e-02 : f32
    %253 = vector.broadcast %cst_94 : f32 to vector<8x1xf32>
    %254 = arith.mulf %252, %253 : vector<8x1xf32>
    %255 = vector.broadcast %249 : vector<8x1xf32> to vector<8x128xf32>
    %256 = arith.subf %245, %255 : vector<8x128xf32>
    %257 = arith.mulf %249, %249 : vector<8x1xf32>
    %258 = arith.subf %254, %257 : vector<8x1xf32>
    %cst_95 = arith.constant 9.99999974E-6 : f32
    %259 = vector.broadcast %cst_95 : f32 to vector<8x1xf32>
    %260 = arith.addf %258, %259 : vector<8x1xf32>
    %261 = math.rsqrt %260 : vector<8x1xf32>
    %262 = vector.broadcast %261 : vector<8x1xf32> to vector<8x128xf32>
    %263 = arith.mulf %256, %262 : vector<8x128xf32>
    %264 = arith.truncf %263 : vector<8x128xf32> to vector<8x128xbf16>
    %c0_96 = arith.constant 0 : index
    %c0_97 = arith.constant 0 : index
    %c0_98 = arith.constant 0 : index
    %265 = vector.load %arg6[%c0_96, %c0_97, %c0_98] : memref<4x128x128xbf16, #tpu.memory_space<vmem>>, vector<1x128x128xbf16>
    %266 = vector.shape_cast %265 : vector<1x128x128xbf16> to vector<128x128xbf16>
    %cst_99 = arith.constant dense<0.000000e+00> : vector<8x128xf32>
    %267 = tpu.matmul %236, %266, %cst_99 {dimension_numbers = #tpu.dot_dimension_numbers<[1], [0], [0], [1], [0, 0, 1, 1], [], []>} : vector<8x128xbf16>, vector<128x128xbf16>, vector<8x128xf32> -> vector<8x128xf32>
    %c0_100 = arith.constant 0 : index
    %c1536 = arith.constant 1536 : index
    %268 = vector.load %arg7[%c0_100, %c1536] : memref<1x2048xf32, #tpu.memory_space<vmem>>, vector<1x128xf32>
    %269 = vector.broadcast %268 : vector<1x128xf32> to vector<8x128xf32>
    %270 = arith.addf %267, %269 : vector<8x128xf32>
    %c1_101 = arith.constant 1 : index
    %c0_102 = arith.constant 0 : index
    %c0_103 = arith.constant 0 : index
    %271 = vector.load %arg6[%c1_101, %c0_102, %c0_103] : memref<4x128x128xbf16, #tpu.memory_space<vmem>>, vector<1x128x128xbf16>
    %272 = vector.shape_cast %271 : vector<1x128x128xbf16> to vector<128x128xbf16>
    %cst_104 = arith.constant dense<0.000000e+00> : vector<8x128xf32>
    %273 = tpu.matmul %264, %272, %cst_104 {dimension_numbers = #tpu.dot_dimension_numbers<[1], [0], [0], [1], [0, 0, 1, 1], [], []>} : vector<8x128xbf16>, vector<128x128xbf16>, vector<8x128xf32> -> vector<8x128xf32>
    %c0_105 = arith.constant 0 : index
    %c1664 = arith.constant 1664 : index
    %274 = vector.load %arg7[%c0_105, %c1664] : memref<1x2048xf32, #tpu.memory_space<vmem>>, vector<1x128xf32>
    %275 = vector.broadcast %274 : vector<1x128xf32> to vector<8x128xf32>
    %276 = arith.addf %273, %275 : vector<8x128xf32>
    %cst_106 = arith.constant dense<0.000000e+00> : vector<8xf32>
    %277 = vector.multi_reduction <add>, %276, %cst_106 [1] : vector<8x128xf32> to vector<8xf32>
    %278 = vector.shape_cast %277 : vector<8xf32> to vector<8x1xf32>
    %cst_107 = arith.constant 2.500000e-01 : f32
    %279 = vector.broadcast %cst_107 : f32 to vector<8x1xf32>
    %280 = arith.mulf %278, %279 : vector<8x1xf32>
    %281 = vector.broadcast %280 : vector<8x1xf32> to vector<8x128xf32>
    %282 = arith.subf %276, %281 : vector<8x128xf32>
    %283 = arith.addf %270, %282 : vector<8x128xf32>
    %c0_108 = arith.constant 0 : index
    %c256 = arith.constant 256 : index
    %284 = vector.load %arg8[%c0_108, %c256] : memref<8x512xf32, #tpu.memory_space<vmem>>, vector<8x128xf32>
    tpu.vector_store %arg8[%c0_108, %c256], %283 {strides = array<i32>} : memref<8x512xf32, #tpu.memory_space<vmem>>, vector<8x128xf32>,
    %c1_109 = arith.constant 1 : index
    %c0_110 = arith.constant 0 : index
    %c0_111 = arith.constant 0 : index
    %285 = vector.load %arg5[%c1_109, %c0_110, %c0_111] : memref<2x128x256xbf16, #tpu.memory_space<vmem>>, vector<1x128x256xbf16>
    %286 = vector.shape_cast %285 : vector<1x128x256xbf16> to vector<128x256xbf16>
    %cst_112 = arith.constant dense<0.000000e+00> : vector<8x256xf32>
    %287 = tpu.matmul %189, %286, %cst_112 {dimension_numbers = #tpu.dot_dimension_numbers<[1], [0], [0], [1], [0, 0, 1, 1], [], []>} : vector<8x128xbf16>, vector<128x256xbf16>, vector<8x256xf32> -> vector<8x256xf32>
    %c0_113 = arith.constant 0 : index
    %c1280 = arith.constant 1280 : index
    %288 = vector.load %arg7[%c0_113, %c1280] : memref<1x2048xf32, #tpu.memory_space<vmem>>, vector<1x256xf32>
    %289 = vector.broadcast %288 : vector<1x256xf32> to vector<8x256xf32>
    %290 = arith.addf %287, %289 : vector<8x256xf32>
    %291 = vector.extract_strided_slice %290 {offsets = [0, 0], sizes = [8, 128], strides = [1, 1]} : vector<8x256xf32> to vector<8x128xf32>
    %cst_114 = arith.constant 0.000000e+00 : f32
    %292 = vector.broadcast %cst_114 : f32 to vector<8x128xf32>
    %293 = arith.cmpf ogt, %291, %292 : vector<8x128xf32>
    %cst_115 = arith.constant 0.000000e+00 : f32
    %294 = vector.broadcast %cst_115 : f32 to vector<8x128xf32>
    %295 = arith.minimumf %291, %294 : vector<8x128xf32>
    %296 = math.exp %295 : vector<8x128xf32>
    %cst_116 = arith.constant 1.000000e+00 : f32
    %297 = vector.broadcast %cst_116 : f32 to vector<8x128xf32>
    %298 = arith.subf %296, %297 : vector<8x128xf32>
    %299 = arith.select %293, %291, %298 : vector<8x128xi1>, vector<8x128xf32>
    %cst_117 = arith.constant dense<0.000000e+00> : vector<8xf32>
    %300 = vector.multi_reduction <add>, %299, %cst_117 [1] : vector<8x128xf32> to vector<8xf32>
    %301 = vector.shape_cast %300 : vector<8xf32> to vector<8x1xf32>
    %cst_118 = arith.constant 6.250000e-02 : f32
    %302 = vector.broadcast %cst_118 : f32 to vector<8x1xf32>
    %303 = arith.mulf %301, %302 : vector<8x1xf32>
    %304 = arith.mulf %299, %299 : vector<8x128xf32>
    %cst_119 = arith.constant dense<0.000000e+00> : vector<8xf32>
    %305 = vector.multi_reduction <add>, %304, %cst_119 [1] : vector<8x128xf32> to vector<8xf32>
    %306 = vector.shape_cast %305 : vector<8xf32> to vector<8x1xf32>
    %cst_120 = arith.constant 6.250000e-02 : f32
    %307 = vector.broadcast %cst_120 : f32 to vector<8x1xf32>
    %308 = arith.mulf %306, %307 : vector<8x1xf32>
    %309 = vector.broadcast %303 : vector<8x1xf32> to vector<8x128xf32>
    %310 = arith.subf %299, %309 : vector<8x128xf32>
    %311 = arith.mulf %303, %303 : vector<8x1xf32>
    %312 = arith.subf %308, %311 : vector<8x1xf32>
    %cst_121 = arith.constant 9.99999974E-6 : f32
    %313 = vector.broadcast %cst_121 : f32 to vector<8x1xf32>
    %314 = arith.addf %312, %313 : vector<8x1xf32>
    %315 = math.rsqrt %314 : vector<8x1xf32>
    %316 = vector.broadcast %315 : vector<8x1xf32> to vector<8x128xf32>
    %317 = arith.mulf %310, %316 : vector<8x128xf32>
    %318 = arith.truncf %317 : vector<8x128xf32> to vector<8x128xbf16>
    %319 = vector.extract_strided_slice %290 {offsets = [0, 128], sizes = [8, 128], strides = [1, 1]} : vector<8x256xf32> to vector<8x128xf32>
    %cst_122 = arith.constant 0.000000e+00 : f32
    %320 = vector.broadcast %cst_122 : f32 to vector<8x128xf32>
    %321 = arith.cmpf ogt, %319, %320 : vector<8x128xf32>
    %cst_123 = arith.constant 0.000000e+00 : f32
    %322 = vector.broadcast %cst_123 : f32 to vector<8x128xf32>
    %323 = arith.minimumf %319, %322 : vector<8x128xf32>
    %324 = math.exp %323 : vector<8x128xf32>
    %cst_124 = arith.constant 1.000000e+00 : f32
    %325 = vector.broadcast %cst_124 : f32 to vector<8x128xf32>
    %326 = arith.subf %324, %325 : vector<8x128xf32>
    %327 = arith.select %321, %319, %326 : vector<8x128xi1>, vector<8x128xf32>
    %cst_125 = arith.constant dense<0.000000e+00> : vector<8xf32>
    %328 = vector.multi_reduction <add>, %327, %cst_125 [1] : vector<8x128xf32> to vector<8xf32>
    %329 = vector.shape_cast %328 : vector<8xf32> to vector<8x1xf32>
    %cst_126 = arith.constant 6.250000e-02 : f32
    %330 = vector.broadcast %cst_126 : f32 to vector<8x1xf32>
    %331 = arith.mulf %329, %330 : vector<8x1xf32>
    %332 = arith.mulf %327, %327 : vector<8x128xf32>
    %cst_127 = arith.constant dense<0.000000e+00> : vector<8xf32>
    %333 = vector.multi_reduction <add>, %332, %cst_127 [1] : vector<8x128xf32> to vector<8xf32>
    %334 = vector.shape_cast %333 : vector<8xf32> to vector<8x1xf32>
    %cst_128 = arith.constant 6.250000e-02 : f32
    %335 = vector.broadcast %cst_128 : f32 to vector<8x1xf32>
    %336 = arith.mulf %334, %335 : vector<8x1xf32>
    %337 = vector.broadcast %331 : vector<8x1xf32> to vector<8x128xf32>
    %338 = arith.subf %327, %337 : vector<8x128xf32>
    %339 = arith.mulf %331, %331 : vector<8x1xf32>
    %340 = arith.subf %336, %339 : vector<8x1xf32>
    %cst_129 = arith.constant 9.99999974E-6 : f32
    %341 = vector.broadcast %cst_129 : f32 to vector<8x1xf32>
    %342 = arith.addf %340, %341 : vector<8x1xf32>
    %343 = math.rsqrt %342 : vector<8x1xf32>
    %344 = vector.broadcast %343 : vector<8x1xf32> to vector<8x128xf32>
    %345 = arith.mulf %338, %344 : vector<8x128xf32>
    %346 = arith.truncf %345 : vector<8x128xf32> to vector<8x128xbf16>
    %c2_130 = arith.constant 2 : index
    %c0_131 = arith.constant 0 : index
    %c0_132 = arith.constant 0 : index
    %347 = vector.load %arg6[%c2_130, %c0_131, %c0_132] : memref<4x128x128xbf16, #tpu.memory_space<vmem>>, vector<1x128x128xbf16>
    %348 = vector.shape_cast %347 : vector<1x128x128xbf16> to vector<128x128xbf16>
    %cst_133 = arith.constant dense<0.000000e+00> : vector<8x128xf32>
    %349 = tpu.matmul %318, %348, %cst_133 {dimension_numbers = #tpu.dot_dimension_numbers<[1], [0], [0], [1], [0, 0, 1, 1], [], []>} : vector<8x128xbf16>, vector<128x128xbf16>, vector<8x128xf32> -> vector<8x128xf32>
    %c0_134 = arith.constant 0 : index
    %c1792 = arith.constant 1792 : index
    %350 = vector.load %arg7[%c0_134, %c1792] : memref<1x2048xf32, #tpu.memory_space<vmem>>, vector<1x128xf32>
    %351 = vector.broadcast %350 : vector<1x128xf32> to vector<8x128xf32>
    %352 = arith.addf %349, %351 : vector<8x128xf32>
    %c3 = arith.constant 3 : index
    %c0_135 = arith.constant 0 : index
    %c0_136 = arith.constant 0 : index
    %353 = vector.load %arg6[%c3, %c0_135, %c0_136] : memref<4x128x128xbf16, #tpu.memory_space<vmem>>, vector<1x128x128xbf16>
    %354 = vector.shape_cast %353 : vector<1x128x128xbf16> to vector<128x128xbf16>
    %cst_137 = arith.constant dense<0.000000e+00> : vector<8x128xf32>
    %355 = tpu.matmul %346, %354, %cst_137 {dimension_numbers = #tpu.dot_dimension_numbers<[1], [0], [0], [1], [0, 0, 1, 1], [], []>} : vector<8x128xbf16>, vector<128x128xbf16>, vector<8x128xf32> -> vector<8x128xf32>
    %c0_138 = arith.constant 0 : index
    %c1920 = arith.constant 1920 : index
    %356 = vector.load %arg7[%c0_138, %c1920] : memref<1x2048xf32, #tpu.memory_space<vmem>>, vector<1x128xf32>
    %357 = vector.broadcast %356 : vector<1x128xf32> to vector<8x128xf32>
    %358 = arith.addf %355, %357 : vector<8x128xf32>
    %cst_139 = arith.constant dense<0.000000e+00> : vector<8xf32>
    %359 = vector.multi_reduction <add>, %358, %cst_139 [1] : vector<8x128xf32> to vector<8xf32>
    %360 = vector.shape_cast %359 : vector<8xf32> to vector<8x1xf32>
    %cst_140 = arith.constant 2.500000e-01 : f32
    %361 = vector.broadcast %cst_140 : f32 to vector<8x1xf32>
    %362 = arith.mulf %360, %361 : vector<8x1xf32>
    %363 = vector.broadcast %362 : vector<8x1xf32> to vector<8x128xf32>
    %364 = arith.subf %358, %363 : vector<8x128xf32>
    %365 = arith.addf %352, %364 : vector<8x128xf32>
    %c0_141 = arith.constant 0 : index
    %c384_142 = arith.constant 384 : index
    %366 = vector.load %arg8[%c0_141, %c384_142] : memref<8x512xf32, #tpu.memory_space<vmem>>, vector<8x128xf32>
    tpu.vector_store %arg8[%c0_141, %c384_142], %365 {strides = array<i32>} : memref<8x512xf32, #tpu.memory_space<vmem>>, vector<8x128xf32>,
    return
  }
  func.func @transform_0(%arg0: i32) -> (i32, i32) {
    %c0_i32 = arith.constant 0 : i32
    %c0_i32_0 = arith.constant 0 : i32
    return %arg0, %c0_i32 : i32, i32
  }
  func.func @transform_1(%arg0: i32) -> (i32, i32) {
    %c0_i32 = arith.constant 0 : i32
    %c0_i32_0 = arith.constant 0 : i32
    %c0_i32_1 = arith.constant 0 : i32
    return %c0_i32, %c0_i32_0 : i32, i32
  }
  func.func @transform_2(%arg0: i32) -> (i32, i32, i32) {
    %c0_i32 = arith.constant 0 : i32
    %c0_i32_0 = arith.constant 0 : i32
    %c0_i32_1 = arith.constant 0 : i32
    %c0_i32_2 = arith.constant 0 : i32
    return %c0_i32, %c0_i32_0, %c0_i32_1 : i32, i32, i32
  }
  func.func @transform_3(%arg0: i32) -> (i32, i32) {
    %c0_i32 = arith.constant 0 : i32
    %c0_i32_0 = arith.constant 0 : i32
    %c0_i32_1 = arith.constant 0 : i32
    return %c0_i32, %c0_i32_0 : i32, i32
  }
  func.func @transform_4(%arg0: i32) -> (i32, i32, i32) {
    %c0_i32 = arith.constant 0 : i32
    %c0_i32_0 = arith.constant 0 : i32
    %c0_i32_1 = arith.constant 0 : i32
    %c0_i32_2 = arith.constant 0 : i32
    return %c0_i32, %c0_i32_0, %c0_i32_1 : i32, i32, i32
  }
  func.func @transform_5(%arg0: i32) -> (i32, i32, i32) {
    %c0_i32 = arith.constant 0 : i32
    %c0_i32_0 = arith.constant 0 : i32
    %c0_i32_1 = arith.constant 0 : i32
    %c0_i32_2 = arith.constant 0 : i32
    return %c0_i32, %c0_i32_0, %c0_i32_1 : i32, i32, i32
  }
  func.func @transform_6(%arg0: i32) -> (i32, i32) {
    %c0_i32 = arith.constant 0 : i32
    %c0_i32_0 = arith.constant 0 : i32
    %c0_i32_1 = arith.constant 0 : i32
    return %c0_i32, %c0_i32_0 : i32, i32
  }
  func.func @transform_7(%arg0: i32) -> (i32, i32) {
    %c0_i32 = arith.constant 0 : i32
    %c0_i32_0 = arith.constant 0 : i32
    return %arg0, %c0_i32 : i32, i32
  }
}

</mosaic_0001>

<bundles_post_ra>
// kernel: tpu_custom_call.1
= control target key start
LH: loop header
LB: loop body
LE: loop exit
PB: predicated region body
PF: predicated region fallthrough
CT: control target
= control target key end

     0   :  { %12 = vsyncpa [#allocation3], 0  ;;  %s2649_s0 = inlined_call_operand.hbm [shape: f32[8,16], index: 0, kind: input, shape index: {}]   ;;  %s2650_s1 = inlined_call_operand.hbm [shape: bf16[16,384], index: 1, kind: input, shape index: {}]   ;;  %s2651_s2 = inlined_call_operand.hbm [shape: bf16[3,128,128], index: 2, kind: input, shape index: {}]   ;;  %s2652_s3 = inlined_call_operand.hbm [shape: bf16[128,256], index: 3, kind: input, shape index: {}]   ;;  %s2653_s4 = inlined_call_operand.hbm [shape: bf16[2,128,256], index: 4, kind: input, shape index: {}]   ;;  %s2654_s5 = inlined_call_operand.hbm [shape: bf16[4,128,128], index: 5, kind: input, shape index: {}]   ;;  %s2655_s6 = inlined_call_operand.hbm [shape: f32[1,2048], index: 6, kind: input, shape index: {}]   ;;  %s2656_s7 = inlined_call_operand.hbm [shape: f32[8,512], index: 7, kind: output, shape index: {}]  }
   0x1   :  { %13 = vsyncpa [#allocation6], 0 }
   0x2   :  { %14 = vsyncpa [#allocation9], 0 }
   0x3   :  { %15 = vsyncpa [#allocation12], 0 }
   0x4   :  { %16 = vsyncpa [#allocation4], 0  ;;  %s2403_s24 = smov [#allocation5]  }
   0x5   :  { %s32_s25 = sshll.u32 %s2403_s24, 4  ;;  %s33_s25 = int_to_ptr.vmem [resolvable:$true] %s32_s25 }
   0x6   :  { %s2241_s26 = scalar_lea.vmem %s33_s25, 384  ;;  %p2246_p1 = scmp.lt.s32.totalorder %s33_s25, %s33_s25 }
   0x7   :  { %p2242_p0 = scmp.ne.s32.totalorder %s33_s25, %s2241_s26  ;;  %p2247_p2 = scmp.lt.s32.totalorder %s2241_s26, %s2241_s26 }
   0x9   :  { %p2248_p3 = por %p2247_p2, %p2246_p1 }
   0xb   :  { %p2249_p4 = pnand %p2248_p3, %p2242_p0 }
   0xd   :  { %2252 = shalt.err (!%p2249_p4)
}
   0xe   :  { %s2404_s27 = smov 192   ;;  %s2405_s28 = smov 12  }
   0xf   :  { %38 = dma.hbm_to_vmem [thread:$0]  %s2650_s1, 384, %s33_s25, [#allocation6], %s2404_s27, %s2404_s27, %s2405_s28  }
  0x10   :  { %s2406_s8 = smov [#allocation8]  }
  0x11   :  { %s56_s9 = sshll.u32 %s2406_s8, 4  ;;  %s57_s9 = int_to_ptr.vmem [resolvable:$true] %s56_s9 }
  0x12   :  { %s2261_s10 = scalar_lea.vmem %s57_s9, 2048  ;;  %p2266_p6 = scmp.lt.s32.totalorder %s57_s9, %s57_s9 }
  0x13   :  { %p2262_p5 = scmp.ne.s32.totalorder %s57_s9, %s2261_s10  ;;  %p2267_p7 = scmp.lt.s32.totalorder %s2261_s10, %s2261_s10 }
  0x15   :  { %p2268_p8 = por %p2267_p7, %p2266_p6 }
  0x17   :  { %p2269_p9 = pnand %p2268_p8, %p2262_p5 }
  0x19   :  { %2272 = shalt.err (!%p2269_p9)
}
  0x1a   :  { %s2407_s11 = smov 128   ;;  %s2408_s12 = smov 8  }
  0x1b   :  { %62 = dma.hbm_to_vmem [thread:$0]  %s2652_s3, 2048, %s57_s9, [#allocation9], %s2407_s11, %s2407_s11, %s2408_s12  }
  0x1c   :  { %s2409_s1 = smov [#allocation11]   ;;  %s2410_s16 = smov [#allocation2]  }
  0x1d   :  { %s80_s15 = sshll.u32 %s2409_s1, 4  ;;  %s23_s17 = sshll.u32 %s2410_s16, 4  ;;  %s81_s15 = int_to_ptr.vmem [resolvable:$true] %s80_s15  ;;  %s24_s17 = int_to_ptr.vmem [resolvable:$true] %s23_s17 }
  0x1e   :  { %s2281_s18 = scalar_lea.vmem %s81_s15, 4096  ;;  %p2286_p11 = scmp.lt.s32.totalorder %s81_s15, %s81_s15 }
  0x1f   :  { %p2282_p10 = scmp.ne.s32.totalorder %s81_s15, %s2281_s18  ;;  %p2287_p12 = scmp.lt.s32.totalorder %s2281_s18, %s2281_s18 }
  0x21   :  { %p2288_p13 = por %p2287_p12, %p2286_p11 }
  0x23   :  { %p2289_p0 = pnand %p2288_p13, %p2282_p10 }
  0x25   :  { %2292 = shalt.err (!%p2289_p0)
}
  0x26   :  { %s2411_s19 = smov 64   ;;  %s2412_s20 = smov 4  }
  0x27   :  { %86 = dma.hbm_to_vmem [thread:$0]  %s2654_s5, 4096, %s81_s15, [#allocation12], %s2411_s19, %s2411_s19, %s2412_s20  }
  0x28   :  { %s2301_s3 = scalar_lea.vmem %s24_s17, 128  ;;  %p2306_p2 = scmp.lt.s32.totalorder %s24_s17, %s24_s17 }
  0x29   :  { %p2302_p1 = scmp.ne.s32.totalorder %s24_s17, %s2301_s3  ;;  %p2307_p3 = scmp.lt.s32.totalorder %s2301_s3, %s2301_s3 }
  0x2b   :  { %p2308_p4 = por %p2307_p3, %p2306_p2 }
  0x2d   :  { %p2309_p5 = pnand %p2308_p4, %p2302_p1 }
  0x2f   :  { %2312 = shalt.err (!%p2309_p5)
}
  0x30   :  { %26 = dma.hbm_to_vmem [thread:$0]  %s2649_s0, 128, %s24_s17, [#allocation3]  }
  0x31   :  { %s2413_s25 = smov [#allocation7]   ;;  %s2414_s27 = smov [#allocation10]  }
  0x32   :  { %s44_s26 = sshll.u32 %s2413_s25, 4  ;;  %s68_s28 = sshll.u32 %s2414_s27, 4  ;;  %s45_s26 = int_to_ptr.vmem [resolvable:$true] %s44_s26  ;;  %s69_s28 = int_to_ptr.vmem [resolvable:$true] %s68_s28 }
  0x33   :  { %s2321_s29 = scalar_lea.vmem %s45_s26, 3072  ;;  %p2326_p7 = scmp.lt.s32.totalorder %s45_s26, %s45_s26 }
  0x34   :  { %p2322_p6 = scmp.ne.s32.totalorder %s45_s26, %s2321_s29  ;;  %p2327_p8 = scmp.lt.s32.totalorder %s2321_s29, %s2321_s29 }
  0x36   :  { %p2328_p9 = por %p2327_p8, %p2326_p7 }
  0x38   :  { %p2329_p10 = pnand %p2328_p9, %p2322_p6 }
  0x3a   :  { %2332 = shalt.err (!%p2329_p10)
}
  0x3b   :  { %50 = dma.hbm_to_vmem [thread:$0]  %s2651_s2, 3072, %s45_s26, [#allocation6], %s2411_s19, %s2411_s19, %s2412_s20  }
  0x3c   :  { %s2341_s8 = scalar_lea.vmem %s69_s28, 4096  ;;  %p2346_p12 = scmp.lt.s32.totalorder %s69_s28, %s69_s28 }
  0x3d   :  { %p2342_p11 = scmp.ne.s32.totalorder %s69_s28, %s2341_s8  ;;  %p2347_p13 = scmp.lt.s32.totalorder %s2341_s8, %s2341_s8 }
  0x3f   :  { %p2348_p0 = por %p2347_p13, %p2346_p12 }
  0x41   :  { %p2349_p1 = pnand %p2348_p0, %p2342_p11 }
  0x43   :  { %2352 = shalt.err (!%p2349_p1)
}
  0x44   :  { %74 = dma.hbm_to_vmem [thread:$0]  %s2653_s4, 4096, %s69_s28, [#allocation9], %s2407_s11, %s2407_s11, %s2408_s12  }
  0x45   :  { %s2415_s10 = smov [#allocation13]  }
  0x46   :  { %s93_s13 = sshll.u32 %s2415_s10, 4  ;;  %s94_s13 = int_to_ptr.vmem [resolvable:$true] %s93_s13 }
  0x47   :  { %s2361_s14 = scalar_lea.vmem %s94_s13, 256  ;;  %p2366_p3 = scmp.lt.s32.totalorder %s94_s13, %s94_s13 }
  0x48   :  { %p2362_p2 = scmp.ne.s32.totalorder %s94_s13, %s2361_s14  ;;  %p2367_p4 = scmp.lt.s32.totalorder %s2361_s14, %s2361_s14 }
  0x4a   :  { %p2368_p5 = por %p2367_p4, %p2366_p3 }
  0x4c   :  { %p2369_p6 = pnand %p2368_p5, %p2362_p2 }
  0x4e   :  { %2372 = shalt.err (!%p2369_p6)
}
  0x4f   :  { %96 = dma.hbm_to_vmem [thread:$0]  %s2655_s6, 256, %s94_s13, [#allocation12]  }
  0x50   :  { %2393 = dma.done.wait [#allocation3], 128  }
  0x51   :  { %2394 = vsyncadd [#allocation3], 4294967168 }
  0x52   :  { %2395 = dma.done.wait [#allocation6], 3456  }
  0x53   :  { %2396 = vsyncadd [#allocation6], 4294963840 }
  0x54   :  { %2397 = dma.done.wait [#allocation9], 6144  }
  0x55   :  { %2398 = vsyncadd [#allocation9], 4294961152 }
  0x56   :  { %2399 = dma.done.wait [#allocation12], 4352  }
  0x57   :  { %2400 = vsyncadd [#allocation12], 4294962944  ;;  %v2416_v0 = vmov 0   ;;  %v2417_v1 = vmov 0.0   ;;  %vm2418_vm0 = vmmov 0   ;;  %v119_v4 = vld [vmem:[#allocation2] sm:$0xff]  ;;  %v127_v9 = vlaneseq }
  0x58   :  { %194 = vmatprep.mubr.bf16.mxu0 %v2416_v0  ;;  %1898 = vmatprep.subr.bf16.mxu1 %v2417_v1  ;;  %v2061_v2 = vld [vmem:[#allocation5 + $0x4] ss:$12 sps:$4 sm:$0xff]   ;;  %v2063_v3 = vld [vmem:[#allocation5] ss:$12 sps:$4 sm:$0xff]   ;;  %v120_v5 = vpack.c.bf16 %v119_v4, %v119_v4  ;;  %vm158_vm1 = vcmask 130048   ;;  %v2071_v47 = vld [vmem:[#allocation7 + $0x20] sm:$0xff]  }
  0x59   :  { %1900 = vmatprep.mubr.msk.bf16.mxu1 %vm2418_vm0, %v2417_v1  ;;  %176 = vmatprep.subr.bf16.mxu0 %v2061_v2  ;;  %v2064_v6 = vld [vmem:[#allocation5 + $0x8] ss:$12 sps:$4 sm:$0xff]   ;;  %v128_v10 = vshrl.u32 %v127_v9, 7  ;;  %v125_v12 = vld [vmem:[#allocation13] sm:$0x7]  ;;  %v2069_v45 = vld [vmem:[#allocation7 + $0x28] sm:$0xff]  }
  0x5a   :  { %177 = vmatpush1.bf16.msra.mxu0 %v2063_v3  ;;  %1899 = vmatpush3.bf16.msra.mxu1 %v2064_v6  ;;  %v2065_v7 = vld [vmem:[#allocation7 + $0x38] sm:$0xff]   ;;  %v2067_v43 = vld [vmem:[#allocation7 + $0x30] sm:$0xff]   ;;  %v2070_v46 = vld [vmem:[#allocation7 + $0x68] sm:$0xff]   ;;  %s2419_s4 = smov [#allocation14]  }
  0x5b   :  { %1904 = vmatprep.subr.bf16.mxu0 %v2417_v1  ;;  %1924 = vmatprep.subr.bf16.mxu1 %v2417_v1  ;;  %v2066_v8 = vld [vmem:[#allocation7 + $0x78] sm:$0xff]   ;;  %v2499_v11 = vsub.s32 0, %v128_v10  ;;  %v2501_v13 = vsub.s32 1, %v128_v10  ;;  %v137_v30 = vsub.s32 2, %v128_v10  ;;  %v2068_v44 = vld [vmem:[#allocation7 + $0x70] sm:$0xff]   ;;  %v2072_v49 = vld [vmem:[#allocation7 + $0x60] sm:$0xff]  }
  0x5c   :  { %v2073_v50 = vld [vmem:[#allocation7 + $0x18] sm:$0xff]   ;;  %v2075_v53 = vld [vmem:[#allocation7 + $0x10] sm:$0xff]   ;;  %v2077_v57 = vld [vmem:[#allocation7 + $0x8] sm:$0xff]   ;;  %s1695_s6 = sshll.u32 %s2419_s4, 4  ;;  %s1696_s6 = int_to_ptr.vmem [resolvable:$true] %s1695_s6 }
  0x5d   :  { %1710 = vmatmul.mubr.msk.bf16.vlgmr.msra.gmra.mxu0 %vm158_vm1, %v120_v5  ;;  %1901 = vmatmul.mubr.msk.bf16.vlgmr.msra.gmra.mxu1 %vm158_vm1, %v120_v5  ;;  %v130_v14 = vrot.slane %v125_v12, %v2499_v11  ;;  %v134_v15 = vrot.slane %v125_v12, %v2501_v13  ;;  %v138_v31 = vrot.slane %v125_v12, %v137_v30  ;;  %v2074_v51 = vld [vmem:[#allocation7 + $0x58] sm:$0xff]   ;;  %v2076_v55 = vld [vmem:[#allocation7 + $0x50] sm:$0xff]   ;;  %v2078_v58 = vld [vmem:[#allocation7 + $0x48] sm:$0xff]   ;;  %s2373_s11 = scalar_lea.vmem %s1696_s6, 512  ;;  %p2378_p8 = scmp.lt.s32.totalorder %s1696_s6, %s1696_s6 }
  0x5e   :  { %1920 = vmatprep.mubr.msk.bf16.mxu0 %vm2418_vm0, %v2417_v1  ;;  %1940 = vmatprep.mubr.msk.bf16.mxu1 %vm2418_vm0, %v2417_v1  ;;  %v2079_v59 = vld [vmem:[#allocation7] sm:$0xff]   ;;  %p2374_p7 = scmp.ne.s32.totalorder %s1696_s6, %s2373_s11  ;;  %p2379_p9 = scmp.lt.s32.totalorder %s2373_s11, %s2373_s11 }
  0x5f   :  { %1905 = vmatpush3.bf16.msra.mxu0 %v2065_v7  ;;  %1925 = vmatpush3.bf16.msra.mxu1 %v2066_v8  ;;  %v2080_v60 = vld [vmem:[#allocation7 + $0x40] sm:$0xff]  }
  0x60   :  { %1906 = vmatprep.subr.bf16.mxu0 %v2417_v1  ;;  %1926 = vmatprep.subr.bf16.mxu1 %v2417_v1  ;;  %p2380_p10 = por %p2379_p9, %p2378_p8 }
  0x62   :  { %p2381_p11 = pnand %p2380_p10, %p2374_p7 }
  0x63   :  { %1907 = vmatpush3.bf16.msra.mxu0 %v2067_v43  ;;  %1927 = vmatpush3.bf16.msra.mxu1 %v2068_v44  ;;  %v2091_v43 = vld [vmem:[#allocation10 + $0x74] ss:$8 sps:$4 sm:$0xff]   ;;  %v2092_v44 = vld [vmem:[#allocation8 + $0x70] ss:$8 sps:$4 sm:$0xff]  }
  0x64   :  { %1908 = vmatprep.subr.bf16.mxu0 %v2417_v1  ;;  %1928 = vmatprep.subr.bf16.mxu1 %v2417_v1 }
  0x67   :  { %1909 = vmatpush3.bf16.msra.mxu0 %v2069_v45  ;;  %1929 = vmatpush3.bf16.msra.mxu1 %v2070_v46  ;;  %v2094_v45 = vld [vmem:[#allocation8 + $0x74] ss:$8 sps:$4 sm:$0xff]   ;;  %v2097_v46 = vld [vmem:[#allocation10 + $0x64] ss:$8 sps:$4 sm:$0xff]  }
  0x68   :  { %1910 = vmatprep.subr.bf16.mxu0 %v2417_v1  ;;  %1930 = vmatprep.subr.bf16.mxu1 %v2417_v1 }
  0x6b   :  { %1911 = vmatpush3.bf16.msra.mxu0 %v2071_v47  ;;  %1931 = vmatpush3.bf16.msra.mxu1 %v2072_v49  ;;  %v2095_v47 = vld [vmem:[#allocation10 + $0x60] ss:$8 sps:$4 sm:$0xff]  }
  0x6c   :  { %1912 = vmatprep.subr.bf16.mxu0 %v2417_v1  ;;  %1932 = vmatprep.subr.bf16.mxu1 %v2417_v1 }
  0x6f   :  { %1913 = vmatpush3.bf16.msra.mxu0 %v2073_v50  ;;  %1933 = vmatpush3.bf16.msra.mxu1 %v2074_v51  ;;  %v1724_v50 = vld [vmem:[#allocation13 + $0x4] ss:$0 sm:$0xff] }
  0x70   :  { %1914 = vmatprep.subr.bf16.mxu0 %v2417_v1  ;;  %1934 = vmatprep.subr.bf16.mxu1 %v2417_v1 }
  0x73   :  { %1915 = vmatpush3.bf16.msra.mxu0 %v2075_v53  ;;  %1935 = vmatpush3.bf16.msra.mxu1 %v2076_v55 }
  0x74   :  { %1916 = vmatprep.subr.bf16.mxu0 %v2417_v1  ;;  %1936 = vmatprep.subr.bf16.mxu1 %v2417_v1 }
  0x77   :  { %1917 = vmatpush3.bf16.msra.mxu0 %v2077_v57  ;;  %1937 = vmatpush3.bf16.msra.mxu1 %v2078_v58 }
  0x78   :  { %1918 = vmatprep.subr.bf16.mxu0 %v2417_v1  ;;  %1938 = vmatprep.subr.bf16.mxu1 %v2417_v1 }
  0x7b   :  { %1919 = vmatpush3.bf16.msra.mxu0 %v2079_v59  ;;  %1939 = vmatpush3.bf16.msra.mxu1 %v2080_v60 }
  0x7c   :  { %1944 = vmatprep.subr.bf16.mxu0 %v2417_v1  ;;  %806 = vmatprep.subr.bf16.mxu1 %v2094_v45 }
 0x11d   :  { %v196_v16 = vpop.f32.mrf.mxu0  ;;  %v237_v18 = vpop.f32.mrf.mxu1 }
 0x11e   :  { %v197_v17 = vadd.f32 %v196_v16, %v130_v14  ;;  %v238_v32 = vadd.f32 %v237_v18, %v138_v31 }
 0x11f   :  { %v198_v19 = vpop.f32.mrf.mxu0  ;;  %v1902_v22 = vpop.f32.mrf.mxu1 }
 0x120   :  { %v244_v20 = vmin.f32 %v197_v17, 0.0  ;;  %v199_v21 = vadd.f32 %v198_v19, %v134_v15  ;;  %vm243_vm2 = vcmp.gt.f32.partialorder %v197_v17, 0.0  ;;  %v547_v36 = vmin.f32 %v238_v32, 0.0 }
 0x121   :  { %v200_v23 = vpop.f32.mrf.mxu0  ;;  %v240_v26 = vpop.f32.mrf.mxu1  ;;  %vm546_vm4 = vcmp.gt.f32.partialorder %v238_v32, 0.0 }
 0x122   :  { %v245_v24 = vmul.f32 1.442695, %v244_v20  ;;  %v395_v25 = vmin.f32 %v199_v21, 0.0  ;;  %vm394_vm3 = vcmp.gt.f32.partialorder %v199_v21, 0.0  ;;  %v548_v41 = vmul.f32 1.442695, %v547_v36 }
 0x123   :  { %v201_v27 = vpop.f32.mrf.mxu0  ;;  %v1903_v29 = vpop.f32.mrf.mxu1 }
 0x124   :  { %2193 = vpow2.f32 %v245_v24  ;;  %v396_v28 = vmul.f32 1.442695, %v395_v25  ;;  %v2082_v29 = vld [vmem:[#allocation7 + $0xb0] sm:$0xff]  }
 0x126   :  { %2195 = vpow2.f32 %v396_v28 }
 0x127   :  { %2197 = vpow2.f32 %v548_v41 }
 0x131   :  { %v2194_v33 = vpop.eup %2193 }
 0x132   :  { %v1712_v34 = vadd.f32 -1.0, %v2194_v33  ;;  %v2084_v33 = vld [vmem:[#allocation7 + $0xa0] sm:$0xff]  }
 0x133   :  { %v2196_v35 = vpop.eup %2195 }
 0x134   :  { %v2505_v37 = vsel %vm243_vm2, %v197_v17, %v1712_v34  ;;  %v1723_v38 = vadd.f32 -1.0, %v2196_v35  ;;  %v2198_v48 = vpop.eup %2197  ;;  %v2085_v34 = vld [vmem:[#allocation7 + $0x98] sm:$0xff]   ;;  %v2086_v35 = vld [vmem:[#allocation7 + $0x90] sm:$0xff]  }
 0x135   :  { %249 = vadd.xlane.f32.xlu1 %v2505_v37  ;;  %v252_v40 = vmul.f32 %v2505_v37, %v2505_v37  ;;  %v1734_v52 = vadd.f32 -1.0, %v2198_v48  ;;  %v1713_v48 = vld [vmem:[#allocation13 + $0x3] ss:$0 sm:$0xff] }
 0x136   :  { %v2508_v39 = vsel %vm394_vm3, %v199_v21, %v1723_v38  ;;  %v2081_v21 = vld [vmem:[#allocation7 + $0xb8] sm:$0xff]   ;;  %v2087_v38 = vld [vmem:[#allocation7 + $0x88] sm:$0xff]  }
 0x137   :  { %400 = vadd.xlane.f32.xlu0 %v2508_v39  ;;  %v403_v42 = vmul.f32 %v2508_v39, %v2508_v39  ;;  %v2522_v54 = vsel %vm546_vm4, %v238_v32, %v1734_v52  ;;  %v2083_v32 = vld [vmem:[#allocation7 + $0xa8] sm:$0xff]  }
 0x138   :  { %v555_v56 = vmul.f32 %v2522_v54, %v2522_v54 }
 0x139   :  { %253 = vadd.xlane.f32.xlu1 %v252_v40  ;;  %v2088_v40 = vld [vmem:[#allocation7 + $0x80] sm:$0xff]  }
 0x13b   :  { %404 = vadd.xlane.f32.xlu0 %v403_v42  ;;  %v2089_v42 = vld [vmem:[#allocation10 + $0x70] ss:$8 sps:$4 sm:$0xff]  }
 0x13d   :  { %556 = vadd.xlane.f32.xlu1 %v555_v56 }
 0x13f   :  { %552 = vadd.xlane.f32.xlu0 %v2522_v54 }
 0x1be   :  { %v250_v61 = vpop.xlane.xlu1 %249 }
 0x1bf   :  { %v251_v62 = vmul.f32 0.03125, %v250_v61 }
 0x1c0   :  { %v401_v63 = vpop.xlane.xlu0 %400 }
 0x1c1   :  { %v402_v2 = vmul.f32 0.03125, %v401_v63  ;;  %v257_v4 = vmul.f32 %v251_v62, %v251_v62  ;;  %v256_v15 = vsub.f32 %v2505_v37, %v251_v62 }
 0x1c2   :  { %v254_v3 = vpop.xlane.xlu1 %253 }
 0x1c3   :  { %v255_v5 = vmul.f32 0.03125, %v254_v3  ;;  %v408_v7 = vmul.f32 %v402_v2, %v402_v2  ;;  %v407_v17 = vsub.f32 %v2508_v39, %v402_v2 }
 0x1c4   :  { %v405_v6 = vpop.xlane.xlu0 %404 }
 0x1c5   :  { %v258_v8 = vsub.f32 %v255_v5, %v257_v4  ;;  %v406_v9 = vmul.f32 0.03125, %v405_v6 }
 0x1c6   :  { %v557_v25 = vpop.xlane.xlu1 %556 }
 0x1c7   :  { %v259_v10 = vadd.f32 1e-05, %v258_v8  ;;  %v409_v12 = vsub.f32 %v406_v9, %v408_v7  ;;  %v558_v27 = vmul.f32 0.03125, %v557_v25  ;;  %v2115_v25 = vld [vmem:[#allocation10 + $0x34] ss:$8 sps:$4 sm:$0xff]  }
 0x1c8   :  { %v553_v19 = vpop.xlane.xlu0 %552 }
 0x1c9   :  { %2199 = vrsqrt.f32 %v259_v10  ;;  %v410_v14 = vadd.f32 1e-05, %v409_v12  ;;  %v554_v22 = vmul.f32 0.03125, %v553_v19 }
 0x1cb   :  { %2201 = vrsqrt.f32 %v410_v14  ;;  %v560_v26 = vmul.f32 %v554_v22, %v554_v22  ;;  %v559_v36 = vsub.f32 %v2522_v54, %v554_v22  ;;  %v2100_v14 = vld [vmem:[#allocation8 + $0x64] ss:$8 sps:$4 sm:$0xff]   ;;  %v2104_v22 = vld [vmem:[#allocation8 + $0x50] ss:$8 sps:$4 sm:$0xff]  }
 0x1cd   :  { %v561_v30 = vsub.f32 %v558_v27, %v560_v26  ;;  %v2110_v26 = vld [vmem:[#allocation8 + $0x40] ss:$8 sps:$4 sm:$0xff]   ;;  %v2113_v27 = vld [vmem:[#allocation10 + $0x30] ss:$8 sps:$4 sm:$0xff]  }
 0x1cf   :  { %v562_v31 = vadd.f32 1e-05, %v561_v30  ;;  %v2119_v30 = vld [vmem:[#allocation10 + $0x20] ss:$8 sps:$4 sm:$0xff]  }
 0x1d1   :  { %2203 = vrsqrt.f32 %v562_v31  ;;  %v2121_v31 = vld [vmem:[#allocation10 + $0x24] ss:$8 sps:$4 sm:$0xff]  }
 0x1d6   :  { %v2200_v16 = vpop.eup %2199 }
 0x1d7   :  { %v261_v18 = vmul.f32 %v2200_v16, %v256_v15  ;;  %v2103_v15 = vld [vmem:[#allocation10 + $0x54] ss:$8 sps:$4 sm:$0xff]  }
 0x1d8   :  { %v2202_v20 = vpop.eup %2201 }
 0x1d9   :  { %v262_v23 = vpack.c.bf16 %v261_v18, %v261_v18  ;;  %v412_v24 = vmul.f32 %v2202_v20, %v407_v17  ;;  %v2098_v17 = vld [vmem:[#allocation8 + $0x60] ss:$8 sps:$4 sm:$0xff]   ;;  %v2101_v18 = vld [vmem:[#allocation10 + $0x50] ss:$8 sps:$4 sm:$0xff]   ;;  %v2106_v20 = vld [vmem:[#allocation8 + $0x54] ss:$8 sps:$4 sm:$0xff]  }
 0x1db   :  { %1921 = vmatmul.mubr.bf16.vlgmr.msra.gmra.mxu0 %v262_v23  ;;  %v413_v28 = vpack.c.bf16 %v412_v24, %v412_v24  ;;  %v2107_v23 = vld [vmem:[#allocation10 + $0x40] ss:$8 sps:$4 sm:$0xff]   ;;  %v2112_v24 = vld [vmem:[#allocation8 + $0x44] ss:$8 sps:$4 sm:$0xff]  }
 0x1dc   :  { %1945 = vmatpush3.bf16.msra.mxu0 %v2081_v21  ;;  %1960 = vmatprep.mubr.msk.bf16.mxu0 %vm2418_vm0, %v2417_v1  ;;  %v2109_v21 = vld [vmem:[#allocation10 + $0x44] ss:$8 sps:$4 sm:$0xff]  }
 0x1dd   :  { %1941 = vmatmul.mubr.bf16.vlgmr.msra.gmra.mxu1 %v413_v28  ;;  %1946 = vmatprep.subr.bf16.mxu0 %v2417_v1  ;;  %v2116_v28 = vld [vmem:[#allocation8 + $0x30] ss:$8 sps:$4 sm:$0xff]  }
 0x1de   :  { %838 = vmatprep.mubr.bf16.mxu1 %v2416_v0  ;;  %v2204_v37 = vpop.eup %2203  ;;  %807 = vmatpush1.bf16.msra.mxu1 %v2092_v44 }
 0x1df   :  { %v564_v39 = vmul.f32 %v2204_v37, %v559_v36  ;;  %808 = vmatprep.subr.bf16.mxu1 %v2100_v14  ;;  %v2130_v36 = vld [vmem:[#allocation8 + $0x14] ss:$8 sps:$4 sm:$0xff]   ;;  %v2133_v37 = vld [vmem:[#allocation10 + $0x4] ss:$8 sps:$4 sm:$0xff]  }
 0x1e0   :  { %1947 = vmatpush3.bf16.msra.mxu0 %v2082_v29  ;;  %v2118_v29 = vld [vmem:[#allocation8 + $0x34] ss:$8 sps:$4 sm:$0xff]  }
 0x1e1   :  { %1948 = vmatprep.subr.bf16.mxu0 %v2417_v1  ;;  %v565_v41 = vpack.c.bf16 %v564_v39, %v564_v39  ;;  %v2131_v39 = vld [vmem:[#allocation10] ss:$8 sps:$4 sm:$0xff]  }
 0x1e2   :  { %809 = vmatpush1.bf16.msra.mxu1 %v2098_v17 }
 0x1e3   :  { %810 = vmatprep.subr.bf16.mxu1 %v2106_v20 }
 0x1e4   :  { %1949 = vmatpush3.bf16.msra.mxu0 %v2083_v32  ;;  %v2124_v32 = vld [vmem:[#allocation8 + $0x24] ss:$8 sps:$4 sm:$0xff]  }
 0x1e5   :  { %1950 = vmatprep.subr.bf16.mxu0 %v2417_v1 }
 0x1e6   :  { %811 = vmatpush1.bf16.msra.mxu1 %v2104_v22 }
 0x1e7   :  { %812 = vmatprep.subr.bf16.mxu1 %v2112_v24 }
 0x1e8   :  { %1951 = vmatpush3.bf16.msra.mxu0 %v2084_v33  ;;  %v2127_v33 = vld [vmem:[#allocation10 + $0x14] ss:$8 sps:$4 sm:$0xff]  }
 0x1e9   :  { %1952 = vmatprep.subr.bf16.mxu0 %v2417_v1 }
 0x1ea   :  { %813 = vmatpush1.bf16.msra.mxu1 %v2110_v26 }
 0x1eb   :  { %814 = vmatprep.subr.bf16.mxu1 %v2118_v29 }
 0x1ec   :  { %1953 = vmatpush3.bf16.msra.mxu0 %v2085_v34  ;;  %v2122_v34 = vld [vmem:[#allocation8 + $0x20] ss:$8 sps:$4 sm:$0xff]  }
 0x1ed   :  { %1954 = vmatprep.subr.bf16.mxu0 %v2417_v1 }
 0x1ee   :  { %815 = vmatpush1.bf16.msra.mxu1 %v2116_v28 }
 0x1ef   :  { %816 = vmatprep.subr.bf16.mxu1 %v2124_v32 }
 0x1f0   :  { %1955 = vmatpush3.bf16.msra.mxu0 %v2086_v35  ;;  %v2125_v35 = vld [vmem:[#allocation10 + $0x10] ss:$8 sps:$4 sm:$0xff]  }
 0x1f1   :  { %1956 = vmatprep.subr.bf16.mxu0 %v2417_v1 }
 0x1f2   :  { %817 = vmatpush1.bf16.msra.mxu1 %v2122_v34 }
 0x1f3   :  { %818 = vmatprep.subr.bf16.mxu1 %v2130_v36 }
 0x1f4   :  { %1957 = vmatpush3.bf16.msra.mxu0 %v2087_v38  ;;  %v2128_v38 = vld [vmem:[#allocation8 + $0x10] ss:$8 sps:$4 sm:$0xff]  }
 0x1f5   :  { %1958 = vmatprep.subr.bf16.mxu0 %v2417_v1 }
 0x1f6   :  { %819 = vmatpush1.bf16.msra.mxu1 %v2128_v38 }
 0x1f8   :  { %1959 = vmatpush3.bf16.msra.mxu0 %v2088_v40  ;;  %v2136_v40 = vld [vmem:[#allocation8 + $0x4] ss:$8 sps:$4 sm:$0xff]  }
 0x1f9   :  { %959 = vmatprep.subr.bf16.mxu0 %v2091_v43  ;;  %820 = vmatprep.subr.bf16.mxu1 %v2136_v40 }
 0x1fb   :  { %1961 = vmatmul.mubr.bf16.vlgmr.msra.gmra.mxu0 %v565_v41  ;;  %v2134_v41 = vld [vmem:[#allocation8] ss:$8 sps:$4 sm:$0xff]  }
 0x1fc   :  { %991 = vmatprep.mubr.bf16.mxu0 %v2416_v0  ;;  %960 = vmatpush1.bf16.msra.mxu0 %v2089_v42 }
 0x1fd   :  { %961 = vmatprep.subr.bf16.mxu0 %v2097_v46  ;;  %821 = vmatpush1.bf16.msra.mxu1 %v2134_v41 }
 0x1fe   :  { %1964 = vmatprep.subr.bf16.mxu1 %v2417_v1 }
 0x200   :  { %962 = vmatpush1.bf16.msra.mxu0 %v2095_v47 }
 0x201   :  { %963 = vmatprep.subr.bf16.mxu0 %v2103_v15 }
 0x204   :  { %964 = vmatpush1.bf16.msra.mxu0 %v2101_v18 }
 0x205   :  { %965 = vmatprep.subr.bf16.mxu0 %v2109_v21 }
 0x208   :  { %966 = vmatpush1.bf16.msra.mxu0 %v2107_v23 }
 0x209   :  { %967 = vmatprep.subr.bf16.mxu0 %v2115_v25 }
 0x20c   :  { %968 = vmatpush1.bf16.msra.mxu0 %v2113_v27 }
 0x20d   :  { %969 = vmatprep.subr.bf16.mxu0 %v2121_v31 }
 0x210   :  { %970 = vmatpush1.bf16.msra.mxu0 %v2119_v30 }
 0x211   :  { %971 = vmatprep.subr.bf16.mxu0 %v2127_v33 }
 0x214   :  { %972 = vmatpush1.bf16.msra.mxu0 %v2125_v35 }
 0x215   :  { %973 = vmatprep.subr.bf16.mxu0 %v2133_v37 }
 0x218   :  { %974 = vmatpush1.bf16.msra.mxu0 %v2131_v39 }
 0x219   :  { %1984 = vmatprep.subr.bf16.mxu0 %v2417_v1 }
 0x29b   :  { %v368_v49 = vpop.f32.mrf.mxu0 }
 0x29c   :  { %v369_v51 = vadd.f32 %v1713_v48, %v368_v49 }
 0x29d   :  { %v1922_v52 = vpop.f32.mrf.mxu0  ;;  %v520_v53 = vpop.f32.mrf.mxu1 }
 0x29e   :  { %v375_v54 = vmin.f32 %v369_v51, 0.0  ;;  %v521_v55 = vadd.f32 %v1724_v50, %v520_v53  ;;  %vm374_vm6 = vcmp.gt.f32.partialorder %v369_v51, 0.0 }
 0x29f   :  { %v371_v56 = vpop.f32.mrf.mxu0  ;;  %v1942_v57 = vpop.f32.mrf.mxu1 }
 0x2a0   :  { %v376_v58 = vmul.f32 1.442695, %v375_v54  ;;  %v527_v59 = vmin.f32 %v521_v55, 0.0  ;;  %vm526_vm5 = vcmp.gt.f32.partialorder %v521_v55, 0.0 }
 0x2a1   :  { %v1923_v60 = vpop.f32.mrf.mxu0  ;;  %v523_v61 = vpop.f32.mrf.mxu1 }
 0x2a2   :  { %2205 = vpow2.f32 %v376_v58  ;;  %v528_v62 = vmul.f32 1.442695, %v527_v59 }
 0x2a3   :  { %v1943_v63 = vpop.f32.mrf.mxu1 }
 0x2a4   :  { %2207 = vpow2.f32 %v528_v62 }
 0x2af   :  { %v2206_v2 = vpop.eup %2205 }
 0x2b0   :  { %v1722_v5 = vadd.f32 -1.0, %v2206_v2  ;;  %v2137_v2 = vld [vmem:[#allocation11 + $0x38] sm:$0xff]  }
 0x2b1   :  { %v2208_v3 = vpop.eup %2207 }
 0x2b2   :  { %v1733_v4 = vadd.f32 -1.0, %v2208_v3  ;;  %v2552_v8 = vsel %vm374_vm6, %v369_v51, %v1722_v5  ;;  %v2138_v3 = vld [vmem:[#allocation11 + $0x30] sm:$0xff]  }
 0x2b3   :  { %v383_v9 = vmul.f32 %v2552_v8, %v2552_v8 }
 0x2b4   :  { %v2547_v6 = vsel %vm526_vm5, %v521_v55, %v1733_v4  ;;  %v1735_v4 = vld [vmem:[#allocation13 + $0x5] ss:$0 sm:$0xff] }
 0x2b5   :  { %532 = vadd.xlane.f32.xlu0 %v2547_v6  ;;  %v535_v7 = vmul.f32 %v2547_v6, %v2547_v6 }
 0x2b7   :  { %536 = vadd.xlane.f32.xlu1 %v535_v7 }
 0x2b9   :  { %380 = vadd.xlane.f32.xlu0 %v2552_v8 }
 0x2bb   :  { %384 = vadd.xlane.f32.xlu1 %v383_v9  ;;  %v2557_v10 = vpop.f32.mrf.mxu0  ;;  %v714_v9 = vld [vmem:[#allocation13 + $0x6] sm:$0x3] }
 0x2bc   :  { %v673_v5 = vadd.f32 %v1735_v4, %v2557_v10  ;;  %v719_v17 = vrot.slane %v714_v9, %v2499_v11  ;;  %v723_v21 = vrot.slane %v714_v9, %v2501_v13 }
 0x2bd   :  { %v1962_v12 = vpop.f32.mrf.mxu0 }
 0x2be   :  { %v679_v7 = vmin.f32 %v673_v5, 0.0  ;;  %vm678_vm8 = vcmp.gt.f32.partialorder %v673_v5, 0.0 }
 0x2bf   :  { %v675_v16 = vpop.f32.mrf.mxu0 }
 0x2c0   :  { %v680_v15 = vmul.f32 1.442695, %v679_v7 }
 0x2c1   :  { %v1963_v19 = vpop.f32.mrf.mxu0 }
 0x33e   :  { %v533_v42 = vpop.xlane.xlu0 %532 }
 0x33f   :  { %v534_v43 = vmul.f32 0.03125, %v533_v42 }
 0x340   :  { %v537_v44 = vpop.xlane.xlu1 %536 }
 0x341   :  { %v540_v45 = vmul.f32 %v534_v43, %v534_v43  ;;  %v538_v46 = vmul.f32 0.03125, %v537_v44  ;;  %v539_v56 = vsub.f32 %v2547_v6, %v534_v43  ;;  %v867_v6 = vld [vmem:[#allocation13 + $0x8] sm:$0x3] }
 0x342   :  { %v381_v47 = vpop.xlane.xlu0 %380  ;;  %v876_v12 = vrot.slane %v867_v6, %v2501_v13 }
 0x343   :  { %v541_v48 = vsub.f32 %v538_v46, %v540_v45  ;;  %v382_v49 = vmul.f32 0.03125, %v381_v47  ;;  %v2139_v46 = vld [vmem:[#allocation11 + $0x28] sm:$0xff]   ;;  %v2140_v47 = vld [vmem:[#allocation11 + $0x78] sm:$0xff]  }
 0x344   :  { %v385_v50 = vpop.xlane.xlu1 %384 }
 0x345   :  { %v542_v51 = vadd.f32 1e-05, %v541_v48  ;;  %v388_v52 = vmul.f32 %v382_v49, %v382_v49  ;;  %v386_v53 = vmul.f32 0.03125, %v385_v50  ;;  %v387_v59 = vsub.f32 %v2552_v8, %v382_v49  ;;  %v2141_v48 = vld [vmem:[#allocation11 + $0x20] sm:$0xff]   ;;  %v2142_v49 = vld [vmem:[#allocation11 + $0x70] sm:$0xff]   ;;  %v2143_v50 = vld [vmem:[#allocation11 + $0x18] sm:$0xff]  }
 0x346   :  { %v872_v8 = vrot.slane %v867_v6, %v2499_v11 }
 0x347   :  { %2209 = vrsqrt.f32 %v542_v51  ;;  %v389_v54 = vsub.f32 %v386_v53, %v388_v52  ;;  %v2144_v51 = vld [vmem:[#allocation11 + $0x68] sm:$0xff]   ;;  %v2145_v52 = vld [vmem:[#allocation11 + $0x10] sm:$0xff]   ;;  %v2146_v53 = vld [vmem:[#allocation11 + $0x60] sm:$0xff]  }
 0x349   :  { %v390_v55 = vadd.f32 1e-05, %v389_v54  ;;  %v2147_v54 = vld [vmem:[#allocation11 + $0x8] sm:$0xff]  }
 0x34b   :  { %2211 = vrsqrt.f32 %v390_v55  ;;  %v2148_v55 = vld [vmem:[#allocation11 + $0x58] sm:$0xff]  }
 0x34c   :  { %2213 = vpow2.f32 %v680_v15 }
 0x354   :  { %v2210_v57 = vpop.eup %2209 }
 0x355   :  { %v544_v58 = vmul.f32 %v2210_v57, %v539_v56  ;;  %v2149_v56 = vld [vmem:[#allocation11] sm:$0xff]   ;;  %v2153_v57 = vld [vmem:[#allocation10 + $0xf4] ss:$8 sps:$4 sm:$0xff]  }
 0x357   :  { %v545_v60 = vpack.c.bf16 %v544_v58, %v544_v58  ;;  %v2150_v58 = vld [vmem:[#allocation11 + $0x50] sm:$0xff]  }
 0x358   :  { %v2212_v61 = vpop.eup %2211 }
 0x359   :  { %992 = vmatmul.mubr.bf16.vlgmr.msra.gmra.mxu0 %v545_v60  ;;  %v392_v62 = vmul.f32 %v2212_v61, %v387_v59  ;;  %v2214_v34 = vpop.eup %2213  ;;  %v2154_v59 = vld [vmem:[#allocation11 + $0x48] sm:$0xff]   ;;  %v2158_v60 = vld [vmem:[#allocation11 + $0x40] sm:$0xff]  }
 0x35a   :  { %2000 = vmatprep.mubr.msk.bf16.mxu0 %vm2418_vm0, %v2417_v1  ;;  %v1744_v37 = vadd.f32 -1.0, %v2214_v34  ;;  %1985 = vmatpush3.bf16.msra.mxu0 %v2140_v47  ;;  %v2164_v34 = vld [vmem:[#allocation10 + $0xc4] ss:$8 sps:$4 sm:$0xff]  }
 0x35b   :  { %v393_v63 = vpack.c.bf16 %v392_v62, %v392_v62  ;;  %1986 = vmatprep.subr.bf16.mxu0 %v2417_v1 }
 0x35c   :  { %v2579_v41 = vsel %vm678_vm8, %v673_v5, %v1744_v37  ;;  %v2167_v37 = vld [vmem:[#allocation10 + $0xb4] ss:$8 sps:$4 sm:$0xff]  }
 0x35d   :  { %839 = vmatmul.mubr.bf16.vlgmr.msra.gmra.mxu1 %v393_v63  ;;  %v687_v43 = vmul.f32 %v2579_v41, %v2579_v41 }
 0x35e   :  { %1980 = vmatprep.mubr.msk.bf16.mxu1 %vm2418_vm0, %v2417_v1  ;;  %1965 = vmatpush3.bf16.msra.mxu1 %v2137_v2 }
 0x35f   :  { %1966 = vmatprep.subr.bf16.mxu1 %v2417_v1  ;;  %1987 = vmatpush3.bf16.msra.mxu0 %v2142_v49  ;;  %v2177_v49 = vld [vmem:[#allocation11 + $0xf8] sm:$0xff]  }
 0x360   :  { %1988 = vmatprep.subr.bf16.mxu0 %v2417_v1 }
 0x362   :  { %1967 = vmatpush3.bf16.msra.mxu1 %v2138_v3 }
 0x363   :  { %1968 = vmatprep.subr.bf16.mxu1 %v2417_v1  ;;  %1989 = vmatpush3.bf16.msra.mxu0 %v2144_v51 }
 0x364   :  { %1990 = vmatprep.subr.bf16.mxu0 %v2417_v1 }
 0x366   :  { %1969 = vmatpush3.bf16.msra.mxu1 %v2139_v46  ;;  %v2174_v46 = vld [vmem:[#allocation10 + $0x80] ss:$8 sps:$4 sm:$0xff]  }
 0x367   :  { %1970 = vmatprep.subr.bf16.mxu1 %v2417_v1  ;;  %1991 = vmatpush3.bf16.msra.mxu0 %v2146_v53 }
 0x368   :  { %1992 = vmatprep.subr.bf16.mxu0 %v2417_v1 }
 0x36a   :  { %1971 = vmatpush3.bf16.msra.mxu1 %v2141_v48 }
 0x36b   :  { %1972 = vmatprep.subr.bf16.mxu1 %v2417_v1  ;;  %1993 = vmatpush3.bf16.msra.mxu0 %v2148_v55 }
 0x36c   :  { %1994 = vmatprep.subr.bf16.mxu0 %v2417_v1 }
 0x36e   :  { %1973 = vmatpush3.bf16.msra.mxu1 %v2143_v50 }
 0x36f   :  { %1974 = vmatprep.subr.bf16.mxu1 %v2417_v1  ;;  %1995 = vmatpush3.bf16.msra.mxu0 %v2150_v58 }
 0x370   :  { %1996 = vmatprep.subr.bf16.mxu0 %v2417_v1 }
 0x372   :  { %1975 = vmatpush3.bf16.msra.mxu1 %v2145_v52 }
 0x373   :  { %1976 = vmatprep.subr.bf16.mxu1 %v2417_v1  ;;  %1997 = vmatpush3.bf16.msra.mxu0 %v2154_v59 }
 0x374   :  { %1998 = vmatprep.subr.bf16.mxu0 %v2417_v1 }
 0x376   :  { %1977 = vmatpush3.bf16.msra.mxu1 %v2147_v54 }
 0x377   :  { %1978 = vmatprep.subr.bf16.mxu1 %v2417_v1  ;;  %1999 = vmatpush3.bf16.msra.mxu0 %v2158_v60 }
 0x378   :  { %2004 = vmatprep.subr.bf16.mxu0 %v2417_v1 }
 0x37a   :  { %1979 = vmatpush3.bf16.msra.mxu1 %v2149_v56 }
 0x37b   :  { %1378 = vmatprep.subr.bf16.mxu1 %v2153_v57  ;;  %v1286_v57 = vld [vmem:[#allocation13 + $0xa] sm:$0x3] }
 0x37c   :  { %v1291_v58 = vrot.slane %v1286_v57, %v2499_v11  ;;  %v1295_v59 = vrot.slane %v1286_v57, %v2501_v13 }
 0x419   :  { %v993_v14 = vpop.f32.mrf.mxu0 }
 0x41a   :  { %v994_v16 = vadd.f32 %v993_v14, %v872_v8 }
 0x41b   :  { %v995_v18 = vpop.f32.mrf.mxu0 }
 0x41c   :  { %v1001_v19 = vmin.f32 %v994_v16, 0.0  ;;  %v996_v20 = vadd.f32 %v995_v18, %v876_v12  ;;  %vm1000_vm7 = vcmp.gt.f32.partialorder %v994_v16, 0.0 }
 0x41d   :  { %v840_v22 = vpop.f32.mrf.mxu1  ;;  %v997_v23 = vpop.f32.mrf.mxu0 }
 0x41e   :  { %v1002_v10 = vmul.f32 1.442695, %v1001_v19  ;;  %v1021_v24 = vmin.f32 %v996_v20, 0.0  ;;  %v841_v25 = vadd.f32 %v840_v22, %v719_v17  ;;  %vm1020_vm9 = vcmp.gt.f32.partialorder %v996_v20, 0.0  ;;  %v2151_v22 = vld [vmem:[#allocation10 + $0xf0] ss:$8 sps:$4 sm:$0xff]  }
 0x41f   :  { %v842_v26 = vpop.f32.mrf.mxu1  ;;  %v998_v27 = vpop.f32.mrf.mxu0 }
 0x420   :  { %2215 = vpow2.f32 %v1002_v10  ;;  %v1022_v28 = vmul.f32 1.442695, %v1021_v24  ;;  %847 = vst [vmem:[#allocation14] sm:$0xff] %v841_v25  ;;  %v843_v29 = vadd.f32 %v842_v26, %v723_v21  ;;  %v2157_v25 = vld [vmem:[#allocation10 + $0xe4] ss:$8 sps:$4 sm:$0xff]  }
 0x421   :  { %v844_v30 = vpop.f32.mrf.mxu1  ;;  %v2155_v26 = vld [vmem:[#allocation10 + $0xe0] ss:$8 sps:$4 sm:$0xff]  }
 0x422   :  { %v848_v31 = vmax.f32 %v843_v29, -20.0  ;;  %2217 = vpow2.f32 %v1022_v28  ;;  %v2161_v28 = vld [vmem:[#allocation10 + $0xd4] ss:$8 sps:$4 sm:$0xff]  }
 0x423   :  { %v845_v32 = vpop.f32.mrf.mxu1 }
 0x424   :  { %v849_v33 = vmin.f32 %v848_v31, 2.0  ;;  %v2159_v31 = vld [vmem:[#allocation10 + $0xd0] ss:$8 sps:$4 sm:$0xff]  }
 0x426   :  { %850 = vst [vmem:[#allocation14 + $0x8] sm:$0xff] %v849_v33 }
 0x42d   :  { %v2216_v35 = vpop.eup %2215 }
 0x42e   :  { %v1777_v36 = vadd.f32 -1.0, %v2216_v35 }
 0x42f   :  { %v2218_v39 = vpop.eup %2217 }
 0x430   :  { %v2574_v38 = vsel %vm1000_vm7, %v994_v16, %v1777_v36  ;;  %v1778_v42 = vadd.f32 -1.0, %v2218_v39  ;;  %v2162_v36 = vld [vmem:[#allocation10 + $0xc0] ss:$8 sps:$4 sm:$0xff]  }
 0x431   :  { %1006 = vadd.xlane.f32.xlu0 %v2574_v38  ;;  %v1009_v40 = vmul.f32 %v2574_v38, %v2574_v38  ;;  %v2168_v39 = vld [vmem:[#allocation10 + $0xa0] ss:$8 sps:$4 sm:$0xff]  }
 0x432   :  { %v2584_v44 = vsel %vm1020_vm9, %v996_v20, %v1778_v42  ;;  %v2171_v42 = vld [vmem:[#allocation10 + $0x90] ss:$8 sps:$4 sm:$0xff]  }
 0x433   :  { %1010 = vadd.xlane.f32.xlu1 %v1009_v40  ;;  %v1029_v45 = vmul.f32 %v2584_v44, %v2584_v44  ;;  %v2173_v40 = vld [vmem:[#allocation10 + $0x94] ss:$8 sps:$4 sm:$0xff]  }
 0x435   :  { %684 = vadd.xlane.f32.xlu0 %v2579_v41 }
 0x437   :  { %688 = vadd.xlane.f32.xlu1 %v687_v43  ;;  %v2176_v43 = vld [vmem:[#allocation10 + $0x84] ss:$8 sps:$4 sm:$0xff]  }
 0x439   :  { %1026 = vadd.xlane.f32.xlu0 %v2584_v44 }
 0x43d   :  { %1030 = vadd.xlane.f32.xlu0 %v1029_v45 }
 0x4ba   :  { %v1007_v61 = vpop.xlane.xlu0 %1006 }
 0x4bb   :  { %v1008_v62 = vmul.f32 0.0625, %v1007_v61 }
 0x4bc   :  { %v1011_v63 = vpop.xlane.xlu1 %1010 }
 0x4bd   :  { %v1014_v2 = vmul.f32 %v1008_v62, %v1008_v62  ;;  %v1012_v3 = vmul.f32 0.0625, %v1011_v63  ;;  %v1013_v17 = vsub.f32 %v2574_v38, %v1008_v62  ;;  %v2170_v38 = vld [vmem:[#allocation10 + $0xa4] ss:$8 sps:$4 sm:$0xff]  }
 0x4be   :  { %v685_v4 = vpop.xlane.xlu0 %684 }
 0x4bf   :  { %v1015_v5 = vsub.f32 %v1012_v3, %v1014_v2  ;;  %v686_v18 = vmul.f32 0.03125, %v685_v4 }
 0x4c0   :  { %v689_v20 = vpop.xlane.xlu1 %688 }
 0x4c1   :  { %v1016_v6 = vadd.f32 1e-05, %v1015_v5  ;;  %v692_v23 = vmul.f32 %v686_v18, %v686_v18  ;;  %v690_v10 = vmul.f32 0.03125, %v689_v20  ;;  %v691_v45 = vsub.f32 %v2579_v41, %v686_v18  ;;  %v2179_v20 = vld [vmem:[#allocation11 + $0xf0] sm:$0xff]  }
 0x4c2   :  { %v1027_v7 = vpop.xlane.xlu0 %1026 }
 0x4c3   :  { %2219 = vrsqrt.f32 %v1016_v6  ;;  %v1028_v8 = vmul.f32 0.0625, %v1027_v7  ;;  %v693_v27 = vsub.f32 %v690_v10, %v692_v23  ;;  %v2182_v23 = vld [vmem:[#allocation11 + $0xa8] sm:$0xff]   ;;  %v2183_v10 = vld [vmem:[#allocation11 + $0xe0] sm:$0xff]  }
 0x4c5   :  { %v1034_v12 = vmul.f32 %v1028_v8, %v1028_v8  ;;  %v1033_v29 = vsub.f32 %v2584_v44, %v1028_v8  ;;  %v694_v32 = vadd.f32 1e-05, %v693_v27  ;;  %v2187_v27 = vld [vmem:[#allocation11 + $0xd0] sm:$0xff]  }
 0x4c6   :  { %v1031_v9 = vpop.xlane.xlu0 %1030 }
 0x4c7   :  { %v1032_v14 = vmul.f32 0.0625, %v1031_v9 }
 0x4c9   :  { %v1035_v15 = vsub.f32 %v1032_v14, %v1034_v12  ;;  %v1788_v14 = vld [vmem:[#allocation13 + $0xd] ss:$0 sm:$0xff] }
 0x4cb   :  { %v1036_v16 = vadd.f32 1e-05, %v1035_v15 }
 0x4cd   :  { %2221 = vrsqrt.f32 %v1036_v16 }
 0x4ce   :  { %2223 = vrsqrt.f32 %v694_v32  ;;  %v2192_v32 = vld [vmem:[#allocation11 + $0x80] sm:$0xff]  }
 0x4d0   :  { %v2220_v19 = vpop.eup %2219 }
 0x4d1   :  { %v1018_v21 = vmul.f32 %v2220_v19, %v1013_v17  ;;  %v2178_v19 = vld [vmem:[#allocation11 + $0xb8] sm:$0xff]  }
 0x4d3   :  { %v1019_v24 = vpack.c.bf16 %v1018_v21, %v1018_v21  ;;  %v2180_v21 = vld [vmem:[#allocation11 + $0xb0] sm:$0xff]  }
 0x4d5   :  { %1981 = vmatmul.mubr.bf16.vlgmr.msra.gmra.mxu1 %v1019_v24  ;;  %v2184_v24 = vld [vmem:[#allocation11 + $0xa0] sm:$0xff]  }
 0x4d6   :  { %1379 = vmatpush1.bf16.msra.mxu1 %v2151_v22  ;;  %1410 = vmatprep.mubr.bf16.mxu1 %v2416_v0  ;;  %v2165_v0 = vld [vmem:[#allocation10 + $0xb0] ss:$8 sps:$4 sm:$0xff]   ;;  %v2181_v22 = vld [vmem:[#allocation11 + $0xe8] sm:$0xff]  }
 0x4d7   :  { %1380 = vmatprep.subr.bf16.mxu1 %v2157_v25  ;;  %v2185_v25 = vld [vmem:[#allocation11 + $0xd8] sm:$0xff]  }
 0x4da   :  { %v2222_v30 = vpop.eup %2221  ;;  %1381 = vmatpush1.bf16.msra.mxu1 %v2155_v26  ;;  %v2186_v26 = vld [vmem:[#allocation11 + $0x98] sm:$0xff]  }
 0x4db   :  { %1382 = vmatprep.subr.bf16.mxu1 %v2161_v28  ;;  %v1038_v33 = vmul.f32 %v2222_v30, %v1033_v29  ;;  %v2224_v44 = vpop.eup %2223  ;;  %v2188_v28 = vld [vmem:[#allocation11 + $0x90] sm:$0xff]   ;;  %v2189_v29 = vld [vmem:[#allocation11 + $0xc8] sm:$0xff]  }
 0x4dc   :  { %v696_v47 = vmul.f32 %v2224_v44, %v691_v45  ;;  %v2190_v30 = vld [vmem:[#allocation11 + $0x88] sm:$0xff]  }
 0x4dd   :  { %v1039_v35 = vpack.c.bf16 %v1038_v33, %v1038_v33 }
 0x4de   :  { %1383 = vmatpush1.bf16.msra.mxu1 %v2159_v31  ;;  %v697_v48 = vpack.c.bf16 %v696_v47, %v696_v47  ;;  %v2191_v31 = vld [vmem:[#allocation11 + $0xc0] sm:$0xff]  }
 0x4df   :  { %2001 = vmatmul.mubr.bf16.vlgmr.msra.gmra.mxu0 %v1039_v35  ;;  %1384 = vmatprep.subr.bf16.mxu1 %v2164_v34  ;;  %v1779_v35 = vld [vmem:[#allocation13 + $0xc] ss:$0 sm:$0xff] }
 0x4e0   :  { %2020 = vmatprep.mubr.msk.bf16.mxu0 %vm2418_vm0, %v2417_v1  ;;  %2005 = vmatpush3.bf16.msra.mxu0 %v2178_v19 }
 0x4e1   :  { %2006 = vmatprep.subr.bf16.mxu0 %v2417_v1 }
 0x4e2   :  { %1385 = vmatpush1.bf16.msra.mxu1 %v2162_v36 }
 0x4e3   :  { %1386 = vmatprep.subr.bf16.mxu1 %v2167_v37 }
 0x4e4   :  { %2007 = vmatpush3.bf16.msra.mxu0 %v2180_v21 }
 0x4e5   :  { %2008 = vmatprep.subr.bf16.mxu0 %v2417_v1 }
 0x4e6   :  { %1387 = vmatpush1.bf16.msra.mxu1 %v2165_v0 }
 0x4e7   :  { %1388 = vmatprep.subr.bf16.mxu1 %v2170_v38 }
 0x4e8   :  { %2009 = vmatpush3.bf16.msra.mxu0 %v2182_v23 }
 0x4e9   :  { %2010 = vmatprep.subr.bf16.mxu0 %v2417_v1 }
 0x4ea   :  { %1389 = vmatpush1.bf16.msra.mxu1 %v2168_v39 }
 0x4eb   :  { %1390 = vmatprep.subr.bf16.mxu1 %v2173_v40 }
 0x4ec   :  { %2011 = vmatpush3.bf16.msra.mxu0 %v2184_v24 }
 0x4ed   :  { %2012 = vmatprep.subr.bf16.mxu0 %v2417_v1 }
 0x4ee   :  { %1391 = vmatpush1.bf16.msra.mxu1 %v2171_v42 }
 0x4ef   :  { %1392 = vmatprep.subr.bf16.mxu1 %v2176_v43 }
 0x4f0   :  { %2013 = vmatpush3.bf16.msra.mxu0 %v2186_v26 }
 0x4f1   :  { %2014 = vmatprep.subr.bf16.mxu0 %v2417_v1 }
 0x4f2   :  { %1393 = vmatpush1.bf16.msra.mxu1 %v2174_v46 }
 0x4f3   :  { %2024 = vmatprep.subr.bf16.mxu1 %v2417_v1 }
 0x4f4   :  { %2015 = vmatpush3.bf16.msra.mxu0 %v2188_v28 }
 0x4f5   :  { %1411 = vmatmul.mubr.bf16.vlgmr.msra.gmra.mxu1 %v697_v48  ;;  %2016 = vmatprep.subr.bf16.mxu0 %v2417_v1 }
 0x4f6   :  { %2040 = vmatprep.mubr.msk.bf16.mxu1 %vm2418_vm0, %v2417_v1  ;;  %2025 = vmatpush3.bf16.msra.mxu1 %v2177_v49 }
 0x4f7   :  { %2026 = vmatprep.subr.bf16.mxu1 %v2417_v1 }
 0x4f8   :  { %2017 = vmatpush3.bf16.msra.mxu0 %v2190_v30 }
 0x4f9   :  { %2018 = vmatprep.subr.bf16.mxu0 %v2417_v1 }
 0x4fa   :  { %2027 = vmatpush3.bf16.msra.mxu1 %v2179_v20 }
 0x4fb   :  { %2028 = vmatprep.subr.bf16.mxu1 %v2417_v1 }
 0x4fc   :  { %2019 = vmatpush3.bf16.msra.mxu0 %v2192_v32 }
 0x4fe   :  { %2029 = vmatpush3.bf16.msra.mxu1 %v2181_v22 }
 0x4ff   :  { %2030 = vmatprep.subr.bf16.mxu1 %v2417_v1 }
 0x502   :  { %2031 = vmatpush3.bf16.msra.mxu1 %v2183_v10 }
 0x503   :  { %2032 = vmatprep.subr.bf16.mxu1 %v2417_v1 }
 0x506   :  { %2033 = vmatpush3.bf16.msra.mxu1 %v2185_v25 }
 0x507   :  { %2034 = vmatprep.subr.bf16.mxu1 %v2417_v1 }
 0x50a   :  { %2035 = vmatpush3.bf16.msra.mxu1 %v2187_v27 }
 0x50b   :  { %2036 = vmatprep.subr.bf16.mxu1 %v2417_v1 }
 0x50e   :  { %2037 = vmatpush3.bf16.msra.mxu1 %v2189_v29 }
 0x50f   :  { %2038 = vmatprep.subr.bf16.mxu1 %v2417_v1 }
 0x512   :  { %2039 = vmatpush3.bf16.msra.mxu1 %v2191_v31 }
 0x595   :  { %v2612_v50 = vpop.f32.mrf.mxu1 }
 0x596   :  { %v1146_v38 = vadd.f32 %v1779_v35, %v2612_v50 }
 0x597   :  { %v1982_v51 = vpop.f32.mrf.mxu1 }
 0x599   :  { %v1148_v41 = vpop.f32.mrf.mxu1 }
 0x59b   :  { %v1983_v52 = vpop.f32.mrf.mxu1 }
 0x59f   :  { %v1257_v53 = vpop.f32.mrf.mxu0 }
 0x5a0   :  { %v2621_v16 = vadd.f32 %v1788_v14, %v1257_v53 }
 0x5a1   :  { %v2002_v54 = vpop.f32.mrf.mxu0 }
 0x5a3   :  { %v1260_v55 = vpop.f32.mrf.mxu0 }
 0x5a5   :  { %v2003_v56 = vpop.f32.mrf.mxu0 }
 0x5b5   :  { %v1412_v60 = vpop.f32.mrf.mxu1 }
 0x5b6   :  { %v1413_v61 = vadd.f32 %v1412_v60, %v1291_v58 }
 0x5b7   :  { %v1414_v62 = vpop.f32.mrf.mxu1 }
 0x5b8   :  { %v1420_v63 = vmin.f32 %v1413_v61, 0.0  ;;  %v1415_v2 = vadd.f32 %v1414_v62, %v1295_v59  ;;  %vm1419_vm10 = vcmp.gt.f32.partialorder %v1413_v61, 0.0  ;;  %v1824_v59 = vld [vmem:[#allocation13 + $0xf] ss:$0 sm:$0xff] }
 0x5b9   :  { %v1416_v3 = vpop.f32.mrf.mxu1 }
 0x5ba   :  { %v1421_v4 = vmul.f32 1.442695, %v1420_v63  ;;  %v1440_v5 = vmin.f32 %v1415_v2, 0.0  ;;  %vm1439_vm11 = vcmp.gt.f32.partialorder %v1415_v2, 0.0 }
 0x5bb   :  { %v1417_v6 = vpop.f32.mrf.mxu1 }
 0x5bc   :  { %2225 = vpow2.f32 %v1421_v4  ;;  %v1441_v7 = vmul.f32 1.442695, %v1440_v5 }
 0x5be   :  { %2227 = vpow2.f32 %v1441_v7  ;;  %v1815_v7 = vld [vmem:[#allocation13 + $0xe] ss:$0 sm:$0xff] }
 0x5c9   :  { %v2226_v8 = vpop.eup %2225 }
 0x5ca   :  { %v1813_v9 = vadd.f32 -1.0, %v2226_v8 }
 0x5cb   :  { %v2228_v12 = vpop.eup %2227 }
 0x5cc   :  { %v2616_v11 = vsel %vm1419_vm10, %v1413_v61, %v1813_v9  ;;  %v1814_v13 = vadd.f32 -1.0, %v2228_v12 }
 0x5cd   :  { %1425 = vadd.xlane.f32.xlu0 %v2616_v11  ;;  %v1428_v18 = vmul.f32 %v2616_v11, %v2616_v11 }
 0x5ce   :  { %v2619_v15 = vsel %vm1439_vm11, %v1415_v2, %v1814_v13 }
 0x5cf   :  { %1445 = vadd.xlane.f32.xlu1 %v2619_v15  ;;  %v1448_v17 = vmul.f32 %v2619_v15, %v2619_v15 }
 0x5d1   :  { %1263 = vadd.xlane.f32.xlu0 %v2621_v16 }
 0x5d3   :  { %1449 = vadd.xlane.f32.xlu1 %v1448_v17 }
 0x5d7   :  { %1429 = vadd.xlane.f32.xlu1 %v1428_v18 }
 0x656   :  { %v1426_v33 = vpop.xlane.xlu0 %1425 }
 0x657   :  { %v1427_v40 = vmul.f32 0.0625, %v1426_v33 }
 0x658   :  { %v1446_v34 = vpop.xlane.xlu1 %1445 }
 0x659   :  { %v1447_v36 = vmul.f32 0.0625, %v1446_v34  ;;  %v1433_v1 = vmul.f32 %v1427_v40, %v1427_v40  ;;  %v1432_v54 = vsub.f32 %v2616_v11, %v1427_v40 }
 0x65a   :  { %v1264_v37 = vpop.xlane.xlu0 %1263 }
 0x65b   :  { %v1265_v0 = vmul.f32 0.25, %v1264_v37  ;;  %v1453_v42 = vmul.f32 %v1447_v36, %v1447_v36  ;;  %v1452_v52 = vsub.f32 %v2619_v15, %v1447_v36 }
 0x65c   :  { %v1450_v39 = vpop.xlane.xlu1 %1449 }
 0x65d   :  { %v1266_v43 = vsub.f32 %v2621_v16, %v1265_v0  ;;  %v1451_v44 = vmul.f32 0.0625, %v1450_v39 }
 0x65f   :  { %v1267_v45 = vadd.f32 %v1266_v43, %v1146_v38  ;;  %v1454_v46 = vsub.f32 %v1451_v44, %v1453_v42 }
 0x660   :  { %v1430_v47 = vpop.xlane.xlu1 %1429 }
 0x661   :  { %1268 = vst [vmem:[#allocation14 + $0x10] sm:$0xff] %v1267_v45  ;;  %v1455_v48 = vadd.f32 1e-05, %v1454_v46  ;;  %v1431_v49 = vmul.f32 0.0625, %v1430_v47 }
 0x663   :  { %2229 = vrsqrt.f32 %v1455_v48  ;;  %v1434_v51 = vsub.f32 %v1431_v49, %v1433_v1 }
 0x665   :  { %v1435_v41 = vadd.f32 1e-05, %v1434_v51 }
 0x667   :  { %2231 = vrsqrt.f32 %v1435_v41 }
 0x670   :  { %v2230_v50 = vpop.eup %2229 }
 0x671   :  { %v1457_v53 = vmul.f32 %v2230_v50, %v1452_v52 }
 0x673   :  { %v1458_v55 = vpack.c.bf16 %v1457_v53, %v1457_v53 }
 0x674   :  { %v2232_v56 = vpop.eup %2231 }
 0x675   :  { %2041 = vmatmul.mubr.bf16.vlgmr.msra.gmra.mxu1 %v1458_v55  ;;  %v1437_v57 = vmul.f32 %v2232_v56, %v1432_v54 }
 0x677   :  { %v1438_v58 = vpack.c.bf16 %v1437_v57, %v1437_v57 }
 0x679   :  { %2021 = vmatmul.mubr.bf16.vlgmr.msra.gmra.mxu0 %v1438_v58 }
 0x735   :  { %v1677_v60 = vpop.f32.mrf.mxu1 }
 0x736   :  { %v1678_v61 = vadd.f32 %v1824_v59, %v1677_v60 }
 0x737   :  { %v2042_v62 = vpop.f32.mrf.mxu1 }
 0x738   :  { %1683 = vadd.xlane.f32.xlu1 %v1678_v61 }
 0x739   :  { %v1565_v63 = vpop.f32.mrf.mxu0  ;;  %v1680_v2 = vpop.f32.mrf.mxu1 }
 0x73a   :  { %v1566_v12 = vadd.f32 %v1815_v7, %v1565_v63 }
 0x73b   :  { %v2022_v3 = vpop.f32.mrf.mxu0  ;;  %v2043_v4 = vpop.f32.mrf.mxu1 }
 0x73d   :  { %v1568_v5 = vpop.f32.mrf.mxu0 }
 0x73f   :  { %v2023_v6 = vpop.f32.mrf.mxu0 }
 0x7c1   :  { %v1684_v8 = vpop.xlane.xlu1 %1683 }
 0x7c2   :  { %v1685_v9 = vmul.f32 0.25, %v1684_v8 }
 0x7c4   :  { %v1686_v14 = vsub.f32 %v1678_v61, %v1685_v9 }
 0x7c6   :  { %v1687_v11 = vadd.f32 %v1686_v14, %v1566_v12 }
 0x7c8   :  { %1688 = vst [vmem:[#allocation14 + $0x18] sm:$0xff] %v1687_v11 }
 0x7c9   :  { %2384 = shalt.err (!%p2381_p11)
}
 0x7ca   :  { %1698 = dma.vmem_to_hbm [thread:$0]  %s1696_s6, 512, %s2656_s7, [#allocation4]  }
 0x7cb   :  { %2401 = dma.done.wait [#allocation4], 512  }
 0x7cc   :  { %2402 = vsyncadd [#allocation4], 4294966784 }
 0x7cd   :  { %1702 = vsyncpa [#allocation3], 1 }
 0x7ce   :  { %1703 = vsyncpa [#allocation6], 1 }
 0x7cf   :  { %1704 = vsyncpa [#allocation9], 1 }
 0x7d0   :  { %1705 = vsyncpa [#allocation12], 1 }
 0x7d1   :  { %1706 = vsyncpa [#allocation4], 1 }

</bundles_post_ra>
